<compile_context>
chip_gen: v7x
topology: tpu7x:2x2x1
jax: 0.10.0
libtpu: 0.0.40
codegen_flags: <defaults>
</compile_context>

<pallas_src>
import functools
import math

import jax
import jax.numpy as jnp
from jax.experimental import pallas as pl
from jax.experimental.pallas import tpu as pltpu


# Scoped-VMEM budget: safe on all generations (<= ~48-56 MiB recommended for v7x's 64 MiB
# physical VMEM; could be raised to ~100 MiB on v5e/v6e which have 128 MiB physical).
_VMEM_LIMIT_BYTES = 48 * 1024 * 1024


# --------------------- constant-index (weight / LN param) BlockSpecs ---------------------

_BUFFERED_STATE = {"probed": False, "mode": None}


def _weight_pipeline_mode():
    """pl.Buffered(1) for constant-index weight blocks halves their resident VMEM by
    disabling double-buffering.  Probed once on a trivial kernel; falls back to default
    pipelining if this JAX/libtpu build rejects pipeline_mode / Buffered(1)."""
    st = _BUFFERED_STATE
    if st["probed"]:
        return st["mode"]
    st["probed"] = True
    try:
        def _probe(x_ref, o_ref):
            o_ref[...] = x_ref[...] + 1.0

        fn = pl.pallas_call(
            _probe,
            grid=(2,),
            out_shape=jax.ShapeDtypeStruct((8, 128), jnp.float32),
            in_specs=[pl.BlockSpec((8, 128), lambda i: (0, 0),
                                   pipeline_mode=pl.Buffered(1))],
            out_specs=pl.BlockSpec((8, 128), lambda i: (0, 0)),
        )
        jax.block_until_ready(fn(jnp.zeros((8, 128), jnp.float32)))
        st["mode"] = pl.Buffered(1)
    except Exception:
        st["mode"] = None
    return st["mode"]


def _const_spec(shape):
    """BlockSpec for an operand whose block index never changes (weights, LN params).
    All kernels below use 2-D grids."""
    index_map = lambda i, j: (0,) * len(shape)
    mode = _weight_pipeline_mode()
    if mode is None:
        return pl.BlockSpec(shape, index_map)
    return pl.BlockSpec(shape, index_map, pipeline_mode=mode)


# ----------------------------- in-kernel helpers ------------------------------

def _layernorm(x, g, b, eps):
    # annotated-transformer LayerNorm: unbiased std (ddof=1), eps added to std.
    mean = jnp.mean(x, axis=-1, keepdims=True)
    d = x - mean
    var = jnp.sum(d * d, axis=-1, keepdims=True) / (x.shape[-1] - 1)
    inv = pl.reciprocal(jnp.sqrt(var) + eps, approx=True)     # EUP slot; frees the VPU divide
    return g * d * inv + b


# ----------------------------- fused decoder-layer kernel ------------------------------

def _layer_body(x_ref, ln1g_ref, ln1b_ref, wq_ref, bq_ref, wkv_ref, bkv_ref,
                wo_ref, bo_ref, ln2g_ref, ln2b_ref, w1_ref, b1_ref, w2_ref, b2_ref,
                o_ref, k_scr, v_scr, keep, *, n_heads, scale, eps, tq):
    """One fused pre-LN decoder layer for a (tq, D) query tile of one batch element:
         h = x_q + Wo @ MHA(LN1(x))         (masked self-attention)
         o = h   + W2 @ relu(W1 @ LN2(h))   (position-wise FFN)
    K/V for the whole sequence are projected once per batch element (qi == 0) into
    head-major VMEM scratch (H, S, dh); heads are processed with a fori_loop (bounded
    live ranges) that accumulates the output projection per head (dropout = identity
    in eval mode)."""
    qi = pl.program_id(1)
    d = x_ref.shape[2]
    dh = d // n_heads

    # ---- K and V for the full sequence, once per batch element ----
    @pl.when(qi == 0)
    def _():
        x_all = x_ref[0].astype(jnp.float32)                       # (S, D)
        xn = _layernorm(x_all, ln1g_ref[...], ln1b_ref[...], eps)
        kv = (jnp.dot(xn.astype(jnp.bfloat16), wkv_ref[...],
                      preferred_element_type=jnp.float32)
              + bkv_ref[...]).astype(jnp.bfloat16)                 # (S, 2D) = [K | V]
        for h in range(n_heads):                                   # static: layout plumbing only
            k_scr[h] = kv[:, h * dh:(h + 1) * dh]
            v_scr[h] = kv[:, d + h * dh:d + (h + 1) * dh]

    # ---- query tile ----
    q_start = pl.multiple_of(qi * tq, tq)
    x_q = x_ref[0, pl.ds(q_start, tq), :].astype(jnp.float32)      # (tq, D)
    xn_q = _layernorm(x_q, ln1g_ref[...], ln1b_ref[...], eps).astype(jnp.bfloat16)

    def head_body(h, y_acc):
        off = pl.multiple_of(h * dh, dh)
        qh = (jnp.dot(xn_q, wq_ref[:, pl.ds(off, dh)],
                      preferred_element_type=jnp.float32)
              + bq_ref[:, pl.ds(off, dh)]).astype(jnp.bfloat16)    # (tq, dh)
        sc = jax.lax.dot_general(qh, k_scr[h], (((1,), (1,)), ((), ())),
                                 preferred_element_type=jnp.float32) * scale   # (tq, S)
        sc = jnp.where(keep, sc, -1e9)                             # masked_fill(mask == 0, -1e9)
        m = jnp.max(sc, axis=-1, keepdims=True)
        e = jnp.exp(sc - m)
        p = (e * pl.reciprocal(jnp.sum(e, axis=-1, keepdims=True),
                               approx=True)).astype(jnp.bfloat16)
        head_out = jnp.dot(p, v_scr[h], preferred_element_type=jnp.float32)    # (tq, dh)
        # fold this head's slice of the output projection in immediately
        return y_acc + jnp.dot(head_out.astype(jnp.bfloat16),
                               wo_ref[pl.ds(off, dh), :],
                               preferred_element_type=jnp.float32)

    y = jax.lax.fori_loop(0, n_heads, head_body, jnp.zeros((tq, d), jnp.float32))
    h1 = x_q + y + bo_ref[...]                                     # residual 1

    # ---- LN2 + position-wise FFN + residual (no HBM round-trip between sublayers) ----
    hn = _layernorm(h1, ln2g_ref[...], ln2b_ref[...], eps)
    f = jnp.dot(hn.astype(jnp.bfloat16), w1_ref[...],
                preferred_element_type=jnp.float32) + b1_ref[...]
    f = jnp.maximum(f, 0.0)
    y2 = jnp.dot(f.astype(jnp.bfloat16), w2_ref[...],
                 preferred_element_type=jnp.float32) + b2_ref[...]
    o_ref[0] = (h1 + y2).astype(o_ref.dtype)


def layer_kernel_causal(x_ref, ln1g, ln1b, wq, bq, wkv, bkv, wo, bo,
                        ln2g, ln2b, w1, b1, w2, b2, o_ref, k_scr, v_scr,
                        *, n_heads, scale, eps, tq):
    # causal (subsequent) mask generated in-kernel: no (B, S, S) mask HBM traffic.
    s_len = x_ref.shape[1]
    qi = pl.program_id(1)
    row = qi * tq + jax.lax.broadcasted_iota(jnp.int32, (tq, s_len), 0)
    col = jax.lax.broadcasted_iota(jnp.int32, (tq, s_len), 1)
    keep = row >= col
    _layer_body(x_ref, ln1g, ln1b, wq, bq, wkv, bkv, wo, bo, ln2g, ln2b,
                w1, b1, w2, b2, o_ref, k_scr, v_scr, keep,
                n_heads=n_heads, scale=scale, eps=eps, tq=tq)


def layer_kernel_masked(x_ref, ln1g, ln1b, wq, bq, wkv, bkv, wo, bo,
                        ln2g, ln2b, w1, b1, w2, b2, mask_ref, o_ref, k_scr, v_scr,
                        *, n_heads, scale, eps, tq):
    keep = mask_ref[0] != 0                                        # (tq, S) int8 -> bool
    _layer_body(x_ref, ln1g, ln1b, wq, bq, wkv, bkv, wo, bo, ln2g, ln2b,
                w1, b1, w2, b2, o_ref, k_scr, v_scr, keep,
                n_heads=n_heads, scale=scale, eps=eps, tq=tq)


# ----------------------------- generator kernels ------------------------------

def gen_logits_kernel(x_ref, g_ref, b_ref, w_ref, bias_ref, logits_ref, lse_ref,
                      xn_scr, m_scr, l_scr, *, eps):
    """grid = (row tiles, vocab tiles).  Emits raw logits per (row, vocab) block and an
    online (running max / sum-exp) logsumexp per row block finalized on the last vocab
    tile -- the full (rows, vocab) block never has to be resident in VMEM."""
    v = pl.program_id(1)

    @pl.when(v == 0)
    def _():
        x = x_ref[...].astype(jnp.float32)
        xn_scr[...] = _layernorm(x, g_ref[...], b_ref[...], eps).astype(jnp.bfloat16)
        m_scr[...] = jnp.full(m_scr.shape, -jnp.inf, jnp.float32)
        l_scr[...] = jnp.zeros(l_scr.shape, jnp.float32)

    # padded vocab columns carry bias -1e30 (kept in f32): exp underflows to exactly 0.
    logits = jnp.dot(xn_scr[...], w_ref[...],
                     preferred_element_type=jnp.float32) + bias_ref[...]
    logits_ref[...] = logits

    m_prev = m_scr[...]
    m_new = jnp.maximum(m_prev, jnp.max(logits, axis=-1, keepdims=True))
    l_scr[...] = (l_scr[...] * jnp.exp(m_prev - m_new)
                  + jnp.sum(jnp.exp(logits - m_new), axis=-1, keepdims=True))
    m_scr[...] = m_new

    @pl.when(v == pl.num_programs(1) - 1)
    def _():
        lse_ref[...] = m_scr[...] + jnp.log(l_scr[...])


def gen_norm_kernel(logits_ref, lse_ref, o_ref):
    o_ref[...] = logits_ref[...] - lse_ref[...]


# ----------------------------- tiling helpers ------------------------------

def _seq_tile(s, cap=256):
    """Query-tile size: largest multiple-of-8 divisor of s that is <= cap."""
    if s <= cap:
        return s
    t = cap - (cap % 8)
    while t >= 8:
        if s % t == 0:
            return t
        t -= 8
    # TODO(synk): pad the sequence (and mask the padded keys) for awkward S instead of
    # falling back to a whole-sequence tile.
    return s


def _round_up(n, m):
    return ((n + m - 1) // m) * m


def _vocab_tile(vpad, cap=2048):
    """Vocab-tile size: largest multiple-of-128 divisor of vpad that is <= cap."""
    t = min(vpad, cap)
    t -= t % 128
    while t >= 128:
        if vpad % t == 0:
            return t
        t -= 128
    return vpad


# ----------------------------- kernel wrappers ------------------------------

def decoder_layer(x, mask, lp, n_heads, eps=1e-6):
    """x: (B, S, D) f32.  One pre-LN decoder layer (attention sublayer + FFN sublayer)
    fused into a single pallas_call; grid = (batch, query tiles)."""
    b, s, d = x.shape
    dff = lp["w1"].shape[1]
    dh = d // n_heads
    scale = 1.0 / math.sqrt(dh)
    tq = _seq_tile(s)
    causal = mask is None
    kern_fn = layer_kernel_causal if causal else layer_kernel_masked
    kern = functools.partial(kern_fn, n_heads=n_heads, scale=scale, eps=eps, tq=tq)

    in_specs = [
        pl.BlockSpec((1, s, d), lambda bb, qi: (bb, 0, 0)),   # x: full sequence of batch bb
        _const_spec((1, d)),            # ln1 gain
        _const_spec((1, d)),            # ln1 bias
        _const_spec((d, d)),            # Wq  (bf16)
        _const_spec((1, d)),            # bq
        _const_spec((d, 2 * d)),        # Wkv (bf16), [K | V]
        _const_spec((1, 2 * d)),        # bkv
        _const_spec((d, d)),            # Wo  (bf16)
        _const_spec((1, d)),            # bo
        _const_spec((1, d)),            # ln2 gain
        _const_spec((1, d)),            # ln2 bias
        _const_spec((d, dff)),          # W1  (bf16)
        _const_spec((1, dff)),          # b1
        _const_spec((dff, d)),          # W2  (bf16)
        _const_spec((1, d)),            # b2
    ]
    args = [x,
            lp["ln1_g"].reshape(1, d), lp["ln1_b"].reshape(1, d),
            lp["wq"], lp["bq"].reshape(1, d),
            lp["wkv"], lp["bkv"].reshape(1, 2 * d),
            lp["wo"], lp["bo"].reshape(1, d),
            lp["ln2_g"].reshape(1, d), lp["ln2_b"].reshape(1, d),
            lp["w1"], lp["b1"].reshape(1, dff),
            lp["w2"], lp["b2"].reshape(1, d)]
    if not causal:
        in_specs.append(pl.BlockSpec((1, tq, s), lambda bb, qi: (bb, qi, 0)))  # int8 mask tile
        args.append(mask)

    return pl.pallas_call(
        kern,
        grid=(b, s // tq),
        out_shape=jax.ShapeDtypeStruct((b, s, d), x.dtype),
        in_specs=in_specs,
        out_specs=pl.BlockSpec((1, tq, d), lambda bb, qi: (bb, qi, 0)),
        scratch_shapes=[pltpu.VMEM((n_heads, s, dh), jnp.bfloat16),   # K, head-major
                        pltpu.VMEM((n_heads, s, dh), jnp.bfloat16)],  # V, head-major
        compiler_params=pltpu.CompilerParams(
            # query-tile axis is "arbitrary": K/V scratch computed at qi == 0 is reused by
            # later tiles of the same batch element (batch axis stays megacore-parallel).
            dimension_semantics=("parallel", "arbitrary"),
            vmem_limit_bytes=_VMEM_LIMIT_BYTES),
    )(*args)


def generator(x2, lnf_g, lnf_b, gw_pad, gb_pad, vocab, eps=1e-6):
    """x2: (M, D) f32.  Returns log_softmax(LN_f(x2) @ W + b)[:, :vocab] with the vocab
    dimension tiled (online max/logsumexp) so VMEM use is bounded at large vocab."""
    m, d = x2.shape
    vpad = gw_pad.shape[1]
    tm = min(512, _round_up(m, 8))
    m_pad = _round_up(m, tm)
    if m_pad != m:
        x2 = jnp.pad(x2, ((0, m_pad - m), (0, 0)))
    tv = _vocab_tile(vpad)
    grid = (m_pad // tm, vpad // tv)

    logits, lse = pl.pallas_call(
        functools.partial(gen_logits_kernel, eps=eps),
        grid=grid,
        out_shape=(jax.ShapeDtypeStruct((m_pad, vpad), jnp.float32),
                   jax.ShapeDtypeStruct((m_pad, 1), jnp.float32)),
        in_specs=[pl.BlockSpec((tm, d), lambda r, v: (r, 0)),
                  _const_spec((1, d)),
                  _const_spec((1, d)),
                  pl.BlockSpec((d, tv), lambda r, v: (0, v)),
                  pl.BlockSpec((1, tv), lambda r, v: (0, v))],
        out_specs=(pl.BlockSpec((tm, tv), lambda r, v: (r, v)),
                   pl.BlockSpec((tm, 1), lambda r, v: (r, 0))),
        scratch_shapes=[pltpu.VMEM((tm, d), jnp.bfloat16),   # LN_f(x), once per row tile
                        pltpu.VMEM((tm, 1), jnp.float32),    # running max
                        pltpu.VMEM((tm, 1), jnp.float32)],   # running sum-exp
        compiler_params=pltpu.CompilerParams(
            dimension_semantics=("parallel", "arbitrary"),
            vmem_limit_bytes=_VMEM_LIMIT_BYTES),
    )(x2, lnf_g.reshape(1, d), lnf_b.reshape(1, d), gw_pad, gb_pad.reshape(1, vpad))

    logprobs = pl.pallas_call(
        gen_norm_kernel,
        grid=grid,
        out_shape=jax.ShapeDtypeStruct((m_pad, vpad), jnp.float32),
        in_specs=[pl.BlockSpec((tm, tv), lambda r, v: (r, v)),
                  pl.BlockSpec((tm, 1), lambda r, v: (r, 0))],
        out_specs=pl.BlockSpec((tm, tv), lambda r, v: (r, v)),
        compiler_params=pltpu.CompilerParams(
            dimension_semantics=("parallel", "parallel"),
            vmem_limit_bytes=_VMEM_LIMIT_BYTES),
    )(logits, lse)

    # TODO(synk): at production vocab sizes keep the padded (M, vpad) layout and slice lazily
    # at the consumer instead of paying this XLA copy.
    return logprobs[:m, :vocab]


# ----------------------------- model (glue) ------------------------------

def positional_encoding(max_len, d_model):
    pos = jnp.arange(max_len, dtype=jnp.float32)[:, None]
    div = jnp.exp(jnp.arange(0, d_model, 2, dtype=jnp.float32)
                  * (-math.log(10000.0) / d_model))
    pe = jnp.zeros((max_len, d_model), jnp.float32)
    pe = pe.at[:, 0::2].set(jnp.sin(pos * div))
    pe = pe.at[:, 1::2].set(jnp.cos(pos * div))
    return pe


def decoder_tot_forward(params, src, mask):
    """Equivalent of DecoderTot.forward(src, mask): generator(decoder(embed(src), mask)).

    If mask is None, the standard causal (subsequent) mask is generated inside the layer
    kernel (no HBM mask traffic); otherwise the provided (B, S, S) mask is DMA'd as int8.
    """
    b, s = src.shape
    d = params["emb"].shape[1]
    # TODO(synk): token-embedding gather + positional-encoding add stay as plain JAX glue.
    x = params["emb"][src] * math.sqrt(d) + params["pe"][:s]
    if mask is not None:
        mask = jnp.broadcast_to(mask, (b, s, s)).astype(jnp.int8)
    for lp in params["layers"]:
        x = decoder_layer(x, mask, lp, params["n_heads"])
    out = generator(x.reshape(b * s, d), params["lnf_g"], params["lnf_b"],
                    params["gen_w_pad"], params["gen_b_pad"], params["vocab"])
    return out.reshape(b, s, params["vocab"])


# ----------------------------- deterministic init ------------------------------

def init_params(key, *, vocab, d_model, d_ff, n_layers, n_heads, max_len):
    def dense(k, shape):
        return 0.02 * jax.random.normal(k, shape, jnp.float32)

    keys = iter(jax.random.split(key, 2 + n_layers * 5))
    layers = []
    for _ in range(n_layers):
        layers.append(dict(
            wq=dense(next(keys), (d_model, d_model)).astype(jnp.bfloat16),
            bq=jnp.zeros((d_model,), jnp.float32),
            wkv=dense(next(keys), (d_model, 2 * d_model)).astype(jnp.bfloat16),
            bkv=jnp.zeros((2 * d_model,), jnp.float32),
            wo=dense(next(keys), (d_model, d_model)).astype(jnp.bfloat16),
            bo=jnp.zeros((d_model,), jnp.float32),
            w1=dense(next(keys), (d_model, d_ff)).astype(jnp.bfloat16),
            b1=jnp.zeros((d_ff,), jnp.float32),
            w2=dense(next(keys), (d_ff, d_model)).astype(jnp.bfloat16),
            b2=jnp.zeros((d_model,), jnp.float32),
            ln1_g=jnp.ones((d_model,), jnp.float32), ln1_b=jnp.zeros((d_model,), jnp.float32),
            ln2_g=jnp.ones((d_model,), jnp.float32), ln2_b=jnp.zeros((d_model,), jnp.float32),
        ))

    # generator weights padded so the logits last dim is a multiple of 128 (lane-dense stores);
    # padded logits get bias -1e30 (kept in f32) so they vanish under log_softmax.
    vpad = ((vocab + 127) // 128) * 128
    gen_w = dense(next(keys), (d_model, vocab))
    gen_w_pad = jnp.zeros((d_model, vpad), jnp.float32).at[:, :vocab].set(gen_w)
    gen_w_pad = gen_w_pad.astype(jnp.bfloat16)
    gen_b_pad = jnp.full((vpad,), -1e30, jnp.float32).at[:vocab].set(0.0)

    return dict(
        emb=dense(next(keys), (vocab, d_model)),
        pe=positional_encoding(max_len, d_model),
        layers=layers,
        lnf_g=jnp.ones((d_model,), jnp.float32), lnf_b=jnp.zeros((d_model,), jnp.float32),
        gen_w_pad=gen_w_pad, gen_b_pad=gen_b_pad,
        n_heads=n_heads, vocab=vocab,
    )


# ----------------------------- main ------------------------------

if __name__ == "__main__":
    # Small but MXU/lane-friendly shapes: head_dim = 128 (lane-dense heads),
    # d_model / d_ff multiples of 128, vocab padded to a multiple of 128.
    VOCAB, D_MODEL, D_FF, N_LAYERS, N_HEADS = 13, 256, 512, 2, 2
    B, S = 2, 8

    key = jax.random.PRNGKey(0)
    k_param, k_src = jax.random.split(key)
    params = init_params(k_param, vocab=VOCAB, d_model=D_MODEL, d_ff=D_FF,
                         n_layers=N_LAYERS, n_heads=N_HEADS, max_len=64)

    src = jax.random.randint(k_src, (B, S), 0, VOCAB, dtype=jnp.int32)
    # causal (subsequent) mask, broadcast over batch: (B, S, S), 1 = attend, 0 = blocked
    mask = jnp.broadcast_to(jnp.tril(jnp.ones((S, S), jnp.int32))[None], (B, S, S))

    # Path 1: explicit mask (preserves DecoderTot.forward(src, mask) semantics), DMA'd as int8.
    out = decoder_tot_forward(params, src, mask)
    out = jax.block_until_ready(out)

    assert out.shape == (B, S, VOCAB), out.shape
    # log_softmax sanity: exp(out) rows sum to 1 (padded vocab columns contribute 0)
    row_sums = jnp.sum(jnp.exp(out), axis=-1)
    assert bool(jnp.all(jnp.abs(row_sums - 1.0) < 1e-3)), "log_softmax rows do not sum to 1"

    # Path 2: causal mask generated in-kernel via broadcasted_iota (no mask HBM traffic);
    # must match the explicit-mask path.
    out_causal = decoder_tot_forward(params, src, None)
    out_causal = jax.block_until_ready(out_causal)
    assert bool(jnp.max(jnp.abs(out - out_causal)) < 1e-4), "in-kernel causal mask mismatch"

    print("KERNEL_OK")
</pallas_src>

<mosaic_0001>
module attributes {stable_mosaic.version = 11 : i64} {
  func.func @_probe(%arg0: i32, %arg1: memref<8x128xf32, #tpu.memory_space<vmem>>, %arg2: memref<8x128xf32, #tpu.memory_space<vmem>>) attributes {dimension_semantics = [#tpu.dimension_semantics<arbitrary>], iteration_bounds = array<i64: 2>, scalar_prefetch = 0 : i64, scratch_operands = 0 : i64, tpu.core_type = #tpu.core_type<tc>, window_params = [{pipeline_mode = #tpu.pipeline_mode<synchronous>, transform_indices = @transform_0, window_bounds = array<i64: 8, 128>}, {pipeline_mode = #tpu.pipeline_mode<synchronous>, transform_indices = @transform_1, window_bounds = array<i64: 8, 128>}]} {
    %c0 = arith.constant 0 : index
    %c0_0 = arith.constant 0 : index
    %0 = vector.load %arg1[%c0, %c0_0] : memref<8x128xf32, #tpu.memory_space<vmem>>, vector<8x128xf32>
    %cst = arith.constant 1.000000e+00 : f32
    %1 = vector.broadcast %cst : f32 to vector<8x128xf32>
    %2 = arith.addf %0, %1 : vector<8x128xf32>
    %c0_1 = arith.constant 0 : index
    %c0_2 = arith.constant 0 : index
    %3 = vector.load %arg2[%c0_1, %c0_2] : memref<8x128xf32, #tpu.memory_space<vmem>>, vector<8x128xf32>
    tpu.vector_store %arg2[%c0_1, %c0_2], %2 {strides = array<i32>} : memref<8x128xf32, #tpu.memory_space<vmem>>, vector<8x128xf32>,
    return
  }
  func.func @transform_0(%arg0: i32) -> (i32, i32) {
    %c0_i32 = arith.constant 0 : i32
    %c0_i32_0 = arith.constant 0 : i32
    %c0_i32_1 = arith.constant 0 : i32
    return %c0_i32, %c0_i32_0 : i32, i32
  }
  func.func @transform_1(%arg0: i32) -> (i32, i32) {
    %c0_i32 = arith.constant 0 : i32
    %c0_i32_0 = arith.constant 0 : i32
    %c0_i32_1 = arith.constant 0 : i32
    return %c0_i32, %c0_i32_0 : i32, i32
  }
}

module attributes {stable_mosaic.version = 11 : i64} {
  func.func @layer_kernel_masked(%arg0: i32, %arg1: i32, %arg2: memref<1x8x256xf32, #tpu.memory_space<vmem>>, %arg3: memref<1x256xf32, #tpu.memory_space<vmem>>, %arg4: memref<1x256xf32, #tpu.memory_space<vmem>>, %arg5: memref<256x256xbf16, #tpu.memory_space<vmem>>, %arg6: memref<1x256xf32, #tpu.memory_space<vmem>>, %arg7: memref<256x512xbf16, #tpu.memory_space<vmem>>, %arg8: memref<1x512xf32, #tpu.memory_space<vmem>>, %arg9: memref<256x256xbf16, #tpu.memory_space<vmem>>, %arg10: memref<1x256xf32, #tpu.memory_space<vmem>>, %arg11: memref<1x256xf32, #tpu.memory_space<vmem>>, %arg12: memref<1x256xf32, #tpu.memory_space<vmem>>, %arg13: memref<256x512xbf16, #tpu.memory_space<vmem>>, %arg14: memref<1x512xf32, #tpu.memory_space<vmem>>, %arg15: memref<512x256xbf16, #tpu.memory_space<vmem>>, %arg16: memref<1x256xf32, #tpu.memory_space<vmem>>, %arg17: memref<1x8x8xi8, #tpu.memory_space<vmem>>, %arg18: memref<1x8x256xf32, #tpu.memory_space<vmem>>, %arg19: memref<2x8x128xbf16, #tpu.memory_space<vmem>>, %arg20: memref<2x8x128xbf16, #tpu.memory_space<vmem>>) attributes {dimension_semantics = [#tpu.dimension_semantics<parallel>, #tpu.dimension_semantics<arbitrary>], iteration_bounds = array<i64: 2, 1>, scalar_prefetch = 0 : i64, scratch_operands = 2 : i64, tpu.core_type = #tpu.core_type<tc>, window_params = [{transform_indices = @transform_0, window_bounds = array<i64: 1, 8, 256>}, {pipeline_mode = #tpu.pipeline_mode<synchronous>, transform_indices = @transform_1, window_bounds = array<i64: 1, 256>}, {pipeline_mode = #tpu.pipeline_mode<synchronous>, transform_indices = @transform_2, window_bounds = array<i64: 1, 256>}, {pipeline_mode = #tpu.pipeline_mode<synchronous>, transform_indices = @transform_3, window_bounds = array<i64: 256, 256>}, {pipeline_mode = #tpu.pipeline_mode<synchronous>, transform_indices = @transform_4, window_bounds = array<i64: 1, 256>}, {pipeline_mode = #tpu.pipeline_mode<synchronous>, transform_indices = @transform_5, window_bounds = array<i64: 256, 512>}, {pipeline_mode = #tpu.pipeline_mode<synchronous>, transform_indices = @transform_6, window_bounds = array<i64: 1, 512>}, {pipeline_mode = #tpu.pipeline_mode<synchronous>, transform_indices = @transform_7, window_bounds = array<i64: 256, 256>}, {pipeline_mode = #tpu.pipeline_mode<synchronous>, transform_indices = @transform_8, window_bounds = array<i64: 1, 256>}, {pipeline_mode = #tpu.pipeline_mode<synchronous>, transform_indices = @transform_9, window_bounds = array<i64: 1, 256>}, {pipeline_mode = #tpu.pipeline_mode<synchronous>, transform_indices = @transform_10, window_bounds = array<i64: 1, 256>}, {pipeline_mode = #tpu.pipeline_mode<synchronous>, transform_indices = @transform_11, window_bounds = array<i64: 256, 512>}, {pipeline_mode = #tpu.pipeline_mode<synchronous>, transform_indices = @transform_12, window_bounds = array<i64: 1, 512>}, {pipeline_mode = #tpu.pipeline_mode<synchronous>, transform_indices = @transform_13, window_bounds = array<i64: 512, 256>}, {pipeline_mode = #tpu.pipeline_mode<synchronous>, transform_indices = @transform_14, window_bounds = array<i64: 1, 256>}, {transform_indices = @transform_15, window_bounds = array<i64: 1, 8, 8>}, {transform_indices = @transform_16, window_bounds = array<i64: 1, 8, 256>}]} {
    %c0 = arith.constant 0 : index
    %c0_0 = arith.constant 0 : index
    %c0_1 = arith.constant 0 : index
    %0 = vector.load %arg17[%c0, %c0_0, %c0_1] : memref<1x8x8xi8, #tpu.memory_space<vmem>>, vector<1x8x8xi8>
    %1 = vector.shape_cast %0 : vector<1x8x8xi8> to vector<8x8xi8>
    %c0_i8 = arith.constant 0 : i8
    %2 = vector.broadcast %c0_i8 : i8 to vector<8x8xi8>
    %3 = arith.cmpi ne, %1, %2 : vector<8x8xi8>
    %c0_i32 = arith.constant 0 : i32
    %4 = arith.cmpi eq, %arg1, %c0_i32 : i32
    %5 = arith.extui %4 : i1 to i32
    %c0_i32_2 = arith.constant 0 : i32
    %6 = arith.cmpi ne, %5, %c0_i32_2 : i32
    scf.if %6 {
      %c0_41 = arith.constant 0 : index
      %c0_42 = arith.constant 0 : index
      %c0_43 = arith.constant 0 : index
      %84 = vector.load %arg2[%c0_41, %c0_42, %c0_43] : memref<1x8x256xf32, #tpu.memory_space<vmem>>, vector<1x8x256xf32>
      %85 = vector.shape_cast %84 : vector<1x8x256xf32> to vector<8x256xf32>
      %c0_44 = arith.constant 0 : index
      %c0_45 = arith.constant 0 : index
      %86 = vector.load %arg3[%c0_44, %c0_45] : memref<1x256xf32, #tpu.memory_space<vmem>>, vector<1x256xf32>
      %c0_46 = arith.constant 0 : index
      %c0_47 = arith.constant 0 : index
      %87 = vector.load %arg4[%c0_46, %c0_47] : memref<1x256xf32, #tpu.memory_space<vmem>>, vector<1x256xf32>
      %cst_48 = arith.constant dense<0.000000e+00> : vector<8xf32>
      %88 = vector.multi_reduction <add>, %85, %cst_48 [1] : vector<8x256xf32> to vector<8xf32>
      %89 = vector.shape_cast %88 : vector<8xf32> to vector<8x1xf32>
      %cst_49 = arith.constant 2.560000e+02 : f32
      %90 = vector.broadcast %cst_49 : f32 to vector<8x1xf32>
      %91 = arith.divf %89, %90 : vector<8x1xf32>
      %92 = vector.broadcast %91 : vector<8x1xf32> to vector<8x256xf32>
      %93 = arith.subf %85, %92 : vector<8x256xf32>
      %94 = arith.mulf %93, %93 : vector<8x256xf32>
      %cst_50 = arith.constant dense<0.000000e+00> : vector<8xf32>
      %95 = vector.multi_reduction <add>, %94, %cst_50 [1] : vector<8x256xf32> to vector<8xf32>
      %96 = vector.shape_cast %95 : vector<8xf32> to vector<8x1xf32>
      %cst_51 = arith.constant 2.550000e+02 : f32
      %97 = vector.broadcast %cst_51 : f32 to vector<8x1xf32>
      %98 = arith.divf %96, %97 : vector<8x1xf32>
      %99 = math.sqrt %98 : vector<8x1xf32>
      %cst_52 = arith.constant 9.99999997E-7 : f32
      %100 = vector.broadcast %cst_52 : f32 to vector<8x1xf32>
      %101 = arith.addf %99, %100 : vector<8x1xf32>
      %102 = tpu.reciprocal %101 {approx = true} : vector<8x1xf32> -> vector<8x1xf32>
      %103 = vector.broadcast %86 : vector<1x256xf32> to vector<8x256xf32>
      %104 = arith.mulf %103, %93 : vector<8x256xf32>
      %105 = vector.broadcast %102 : vector<8x1xf32> to vector<8x256xf32>
      %106 = arith.mulf %104, %105 : vector<8x256xf32>
      %107 = vector.broadcast %87 : vector<1x256xf32> to vector<8x256xf32>
      %108 = arith.addf %106, %107 : vector<8x256xf32>
      %109 = arith.truncf %108 : vector<8x256xf32> to vector<8x256xbf16>
      %c0_53 = arith.constant 0 : index
      %c0_54 = arith.constant 0 : index
      %110 = vector.load %arg7[%c0_53, %c0_54] : memref<256x512xbf16, #tpu.memory_space<vmem>>, vector<256x512xbf16>
      %cst_55 = arith.constant dense<0.000000e+00> : vector<8x512xf32>
      %111 = tpu.matmul %109, %110, %cst_55 {dimension_numbers = #tpu.dot_dimension_numbers<[1], [0], [0], [1], [0, 0, 1, 1], [], []>} : vector<8x256xbf16>, vector<256x512xbf16>, vector<8x512xf32> -> vector<8x512xf32>
      %c0_56 = arith.constant 0 : index
      %c0_57 = arith.constant 0 : index
      %112 = vector.load %arg8[%c0_56, %c0_57] : memref<1x512xf32, #tpu.memory_space<vmem>>, vector<1x512xf32>
      %113 = vector.broadcast %112 : vector<1x512xf32> to vector<8x512xf32>
      %114 = arith.addf %111, %113 : vector<8x512xf32>
      %115 = arith.truncf %114 : vector<8x512xf32> to vector<8x512xbf16>
      %116 = vector.extract_strided_slice %115 {offsets = [0, 0], sizes = [8, 128], strides = [1, 1]} : vector<8x512xbf16> to vector<8x128xbf16>
      %c0_58 = arith.constant 0 : index
      %c0_59 = arith.constant 0 : index
      %c0_60 = arith.constant 0 : index
      %117 = vector.load %arg19[%c0_58, %c0_59, %c0_60] : memref<2x8x128xbf16, #tpu.memory_space<vmem>>, vector<1x8x128xbf16>
      %118 = vector.shape_cast %117 : vector<1x8x128xbf16> to vector<8x128xbf16>
      %119 = vector.shape_cast %116 : vector<8x128xbf16> to vector<1x8x128xbf16>
      tpu.vector_store %arg19[%c0_58, %c0_59, %c0_60], %119 {strides = array<i32>} : memref<2x8x128xbf16, #tpu.memory_space<vmem>>, vector<1x8x128xbf16>,
      %120 = vector.extract_strided_slice %115 {offsets = [0, 256], sizes = [8, 128], strides = [1, 1]} : vector<8x512xbf16> to vector<8x128xbf16>
      %c0_61 = arith.constant 0 : index
      %c0_62 = arith.constant 0 : index
      %c0_63 = arith.constant 0 : index
      %121 = vector.load %arg20[%c0_61, %c0_62, %c0_63] : memref<2x8x128xbf16, #tpu.memory_space<vmem>>, vector<1x8x128xbf16>
      %122 = vector.shape_cast %121 : vector<1x8x128xbf16> to vector<8x128xbf16>
      %123 = vector.shape_cast %120 : vector<8x128xbf16> to vector<1x8x128xbf16>
      tpu.vector_store %arg20[%c0_61, %c0_62, %c0_63], %123 {strides = array<i32>} : memref<2x8x128xbf16, #tpu.memory_space<vmem>>, vector<1x8x128xbf16>,
      %124 = vector.extract_strided_slice %115 {offsets = [0, 128], sizes = [8, 128], strides = [1, 1]} : vector<8x512xbf16> to vector<8x128xbf16>
      %c1 = arith.constant 1 : index
      %c0_64 = arith.constant 0 : index
      %c0_65 = arith.constant 0 : index
      %125 = vector.load %arg19[%c1, %c0_64, %c0_65] : memref<2x8x128xbf16, #tpu.memory_space<vmem>>, vector<1x8x128xbf16>
      %126 = vector.shape_cast %125 : vector<1x8x128xbf16> to vector<8x128xbf16>
      %127 = vector.shape_cast %124 : vector<8x128xbf16> to vector<1x8x128xbf16>
      tpu.vector_store %arg19[%c1, %c0_64, %c0_65], %127 {strides = array<i32>} : memref<2x8x128xbf16, #tpu.memory_space<vmem>>, vector<1x8x128xbf16>,
      %128 = vector.extract_strided_slice %115 {offsets = [0, 384], sizes = [8, 128], strides = [1, 1]} : vector<8x512xbf16> to vector<8x128xbf16>
      %c1_66 = arith.constant 1 : index
      %c0_67 = arith.constant 0 : index
      %c0_68 = arith.constant 0 : index
      %129 = vector.load %arg20[%c1_66, %c0_67, %c0_68] : memref<2x8x128xbf16, #tpu.memory_space<vmem>>, vector<1x8x128xbf16>
      %130 = vector.shape_cast %129 : vector<1x8x128xbf16> to vector<8x128xbf16>
      %131 = vector.shape_cast %128 : vector<8x128xbf16> to vector<1x8x128xbf16>
      tpu.vector_store %arg20[%c1_66, %c0_67, %c0_68], %131 {strides = array<i32>} : memref<2x8x128xbf16, #tpu.memory_space<vmem>>, vector<1x8x128xbf16>,
    } else {
    }
    %c8_i32 = arith.constant 8 : i32
    %7 = arith.muli %arg1, %c8_i32 : i32
    %8 = tpu.assume_multiple %7, 8 : i32
    %c0_3 = arith.constant 0 : index
    %9 = arith.index_cast %8 : i32 to index
    %c0_4 = arith.constant 0 : index
    %10 = vector.load %arg2[%c0_3, %9, %c0_4] : memref<1x8x256xf32, #tpu.memory_space<vmem>>, vector<1x8x256xf32>
    %11 = vector.shape_cast %10 : vector<1x8x256xf32> to vector<8x256xf32>
    %c0_5 = arith.constant 0 : index
    %c0_6 = arith.constant 0 : index
    %12 = vector.load %arg3[%c0_5, %c0_6] : memref<1x256xf32, #tpu.memory_space<vmem>>, vector<1x256xf32>
    %c0_7 = arith.constant 0 : index
    %c0_8 = arith.constant 0 : index
    %13 = vector.load %arg4[%c0_7, %c0_8] : memref<1x256xf32, #tpu.memory_space<vmem>>, vector<1x256xf32>
    %cst = arith.constant dense<0.000000e+00> : vector<8xf32>
    %14 = vector.multi_reduction <add>, %11, %cst [1] : vector<8x256xf32> to vector<8xf32>
    %15 = vector.shape_cast %14 : vector<8xf32> to vector<8x1xf32>
    %cst_9 = arith.constant 2.560000e+02 : f32
    %16 = vector.broadcast %cst_9 : f32 to vector<8x1xf32>
    %17 = arith.divf %15, %16 : vector<8x1xf32>
    %18 = vector.broadcast %17 : vector<8x1xf32> to vector<8x256xf32>
    %19 = arith.subf %11, %18 : vector<8x256xf32>
    %20 = arith.mulf %19, %19 : vector<8x256xf32>
    %cst_10 = arith.constant dense<0.000000e+00> : vector<8xf32>
    %21 = vector.multi_reduction <add>, %20, %cst_10 [1] : vector<8x256xf32> to vector<8xf32>
    %22 = vector.shape_cast %21 : vector<8xf32> to vector<8x1xf32>
    %cst_11 = arith.constant 2.550000e+02 : f32
    %23 = vector.broadcast %cst_11 : f32 to vector<8x1xf32>
    %24 = arith.divf %22, %23 : vector<8x1xf32>
    %25 = math.sqrt %24 : vector<8x1xf32>
    %cst_12 = arith.constant 9.99999997E-7 : f32
    %26 = vector.broadcast %cst_12 : f32 to vector<8x1xf32>
    %27 = arith.addf %25, %26 : vector<8x1xf32>
    %28 = tpu.reciprocal %27 {approx = true} : vector<8x1xf32> -> vector<8x1xf32>
    %29 = vector.broadcast %12 : vector<1x256xf32> to vector<8x256xf32>
    %30 = arith.mulf %29, %19 : vector<8x256xf32>
    %31 = vector.broadcast %28 : vector<8x1xf32> to vector<8x256xf32>
    %32 = arith.mulf %30, %31 : vector<8x256xf32>
    %33 = vector.broadcast %13 : vector<1x256xf32> to vector<8x256xf32>
    %34 = arith.addf %32, %33 : vector<8x256xf32>
    %35 = arith.truncf %34 : vector<8x256xf32> to vector<8x256xbf16>
    %cst_13 = arith.constant 0.000000e+00 : f32
    %36 = vector.broadcast %cst_13 : f32 to vector<8x256xf32>
    %c0_i32_14 = arith.constant 0 : i32
    %c2_i32 = arith.constant 2 : i32
    %37 = arith.addi %c0_i32_14, %c2_i32 : i32
    %c1_i32 = arith.constant 1 : i32
    %38 = scf.for %arg21 = %c0_i32_14 to %37 step %c1_i32 iter_args(%arg22 = %36) -> (vector<8x256xf32>)  : i32 {
      %c128_i32 = arith.constant 128 : i32
      %84 = arith.muli %arg21, %c128_i32 : i32
      %85 = tpu.assume_multiple %84, 128 : i32
      %c0_41 = arith.constant 0 : index
      %86 = arith.index_cast %85 : i32 to index
      %87 = vector.load %arg5[%c0_41, %86] : memref<256x256xbf16, #tpu.memory_space<vmem>>, vector<256x128xbf16>
      %cst_42 = arith.constant dense<0.000000e+00> : vector<8x128xf32>
      %88 = tpu.matmul %35, %87, %cst_42 {dimension_numbers = #tpu.dot_dimension_numbers<[1], [0], [0], [1], [0, 0, 1, 1], [], []>} : vector<8x256xbf16>, vector<256x128xbf16>, vector<8x128xf32> -> vector<8x128xf32>
      %c0_43 = arith.constant 0 : index
      %89 = arith.index_cast %85 : i32 to index
      %90 = vector.load %arg6[%c0_43, %89] : memref<1x256xf32, #tpu.memory_space<vmem>>, vector<1x128xf32>
      %91 = vector.broadcast %90 : vector<1x128xf32> to vector<8x128xf32>
      %92 = arith.addf %88, %91 : vector<8x128xf32>
      %93 = arith.truncf %92 : vector<8x128xf32> to vector<8x128xbf16>
      %94 = arith.index_cast %arg21 : i32 to index
      %c0_44 = arith.constant 0 : index
      %c0_45 = arith.constant 0 : index
      %95 = vector.load %arg19[%94, %c0_44, %c0_45] : memref<2x8x128xbf16, #tpu.memory_space<vmem>>, vector<1x8x128xbf16>
      %96 = vector.shape_cast %95 : vector<1x8x128xbf16> to vector<8x128xbf16>
      %cst_46 = arith.constant dense<0.000000e+00> : vector<8x8xf32>
      %97 = tpu.matmul %93, %96, %cst_46 {dimension_numbers = #tpu.dot_dimension_numbers<[1], [1], [0], [0], [0, 0, 1, 0], [], []>} : vector<8x128xbf16>, vector<8x128xbf16>, vector<8x8xf32> -> vector<8x8xf32>
      %cst_47 = arith.constant 0.0883883461 : f32
      %98 = vector.broadcast %cst_47 : f32 to vector<8x8xf32>
      %99 = arith.mulf %97, %98 : vector<8x8xf32>
      %cst_48 = arith.constant -1.000000e+09 : f32
      %100 = vector.broadcast %cst_48 : f32 to vector<8x8xf32>
      %101 = arith.select %3, %99, %100 : vector<8x8xi1>, vector<8x8xf32>
      %cst_49 = arith.constant dense<0xFF800000> : vector<8xf32>
      %102 = vector.multi_reduction <maximumf>, %101, %cst_49 [1] : vector<8x8xf32> to vector<8xf32>
      %103 = vector.shape_cast %102 : vector<8xf32> to vector<8x1xf32>
      %104 = vector.broadcast %103 : vector<8x1xf32> to vector<8x8xf32>
      %105 = arith.subf %101, %104 : vector<8x8xf32>
      %106 = math.exp %105 : vector<8x8xf32>
      %cst_50 = arith.constant dense<0.000000e+00> : vector<8xf32>
      %107 = vector.multi_reduction <add>, %106, %cst_50 [1] : vector<8x8xf32> to vector<8xf32>
      %108 = vector.shape_cast %107 : vector<8xf32> to vector<8x1xf32>
      %109 = tpu.reciprocal %108 {approx = true} : vector<8x1xf32> -> vector<8x1xf32>
      %110 = vector.broadcast %109 : vector<8x1xf32> to vector<8x8xf32>
      %111 = arith.mulf %106, %110 : vector<8x8xf32>
      %112 = arith.truncf %111 : vector<8x8xf32> to vector<8x8xbf16>
      %113 = arith.index_cast %arg21 : i32 to index
      %c0_51 = arith.constant 0 : index
      %c0_52 = arith.constant 0 : index
      %114 = vector.load %arg20[%113, %c0_51, %c0_52] : memref<2x8x128xbf16, #tpu.memory_space<vmem>>, vector<1x8x128xbf16>
      %115 = vector.shape_cast %114 : vector<1x8x128xbf16> to vector<8x128xbf16>
      %cst_53 = arith.constant dense<0.000000e+00> : vector<8x128xf32>
      %116 = tpu.matmul %112, %115, %cst_53 {dimension_numbers = #tpu.dot_dimension_numbers<[1], [0], [0], [1], [0, 0, 1, 1], [], []>} : vector<8x8xbf16>, vector<8x128xbf16>, vector<8x128xf32> -> vector<8x128xf32>
      %117 = arith.truncf %116 : vector<8x128xf32> to vector<8x128xbf16>
      %118 = arith.index_cast %85 : i32 to index
      %c0_54 = arith.constant 0 : index
      %119 = vector.load %arg9[%118, %c0_54] : memref<256x256xbf16, #tpu.memory_space<vmem>>, vector<128x256xbf16>
      %cst_55 = arith.constant dense<0.000000e+00> : vector<8x256xf32>
      %120 = tpu.matmul %117, %119, %cst_55 {dimension_numbers = #tpu.dot_dimension_numbers<[1], [0], [0], [1], [0, 0, 1, 1], [], []>} : vector<8x128xbf16>, vector<128x256xbf16>, vector<8x256xf32> -> vector<8x256xf32>
      %121 = arith.addf %arg22, %120 : vector<8x256xf32>
      scf.yield %121 : vector<8x256xf32>
    }
    %c2_i32_15 = arith.constant 2 : i32
    %39 = arith.addf %11, %38 : vector<8x256xf32>
    %c0_16 = arith.constant 0 : index
    %c0_17 = arith.constant 0 : index
    %40 = vector.load %arg10[%c0_16, %c0_17] : memref<1x256xf32, #tpu.memory_space<vmem>>, vector<1x256xf32>
    %41 = vector.broadcast %40 : vector<1x256xf32> to vector<8x256xf32>
    %42 = arith.addf %39, %41 : vector<8x256xf32>
    %c0_18 = arith.constant 0 : index
    %c0_19 = arith.constant 0 : index
    %43 = vector.load %arg11[%c0_18, %c0_19] : memref<1x256xf32, #tpu.memory_space<vmem>>, vector<1x256xf32>
    %c0_20 = arith.constant 0 : index
    %c0_21 = arith.constant 0 : index
    %44 = vector.load %arg12[%c0_20, %c0_21] : memref<1x256xf32, #tpu.memory_space<vmem>>, vector<1x256xf32>
    %cst_22 = arith.constant dense<0.000000e+00> : vector<8xf32>
    %45 = vector.multi_reduction <add>, %42, %cst_22 [1] : vector<8x256xf32> to vector<8xf32>
    %46 = vector.shape_cast %45 : vector<8xf32> to vector<8x1xf32>
    %cst_23 = arith.constant 2.560000e+02 : f32
    %47 = vector.broadcast %cst_23 : f32 to vector<8x1xf32>
    %48 = arith.divf %46, %47 : vector<8x1xf32>
    %49 = vector.broadcast %48 : vector<8x1xf32> to vector<8x256xf32>
    %50 = arith.subf %42, %49 : vector<8x256xf32>
    %51 = arith.mulf %50, %50 : vector<8x256xf32>
    %cst_24 = arith.constant dense<0.000000e+00> : vector<8xf32>
    %52 = vector.multi_reduction <add>, %51, %cst_24 [1] : vector<8x256xf32> to vector<8xf32>
    %53 = vector.shape_cast %52 : vector<8xf32> to vector<8x1xf32>
    %cst_25 = arith.constant 2.550000e+02 : f32
    %54 = vector.broadcast %cst_25 : f32 to vector<8x1xf32>
    %55 = arith.divf %53, %54 : vector<8x1xf32>
    %56 = math.sqrt %55 : vector<8x1xf32>
    %cst_26 = arith.constant 9.99999997E-7 : f32
    %57 = vector.broadcast %cst_26 : f32 to vector<8x1xf32>
    %58 = arith.addf %56, %57 : vector<8x1xf32>
    %59 = tpu.reciprocal %58 {approx = true} : vector<8x1xf32> -> vector<8x1xf32>
    %60 = vector.broadcast %43 : vector<1x256xf32> to vector<8x256xf32>
    %61 = arith.mulf %60, %50 : vector<8x256xf32>
    %62 = vector.broadcast %59 : vector<8x1xf32> to vector<8x256xf32>
    %63 = arith.mulf %61, %62 : vector<8x256xf32>
    %64 = vector.broadcast %44 : vector<1x256xf32> to vector<8x256xf32>
    %65 = arith.addf %63, %64 : vector<8x256xf32>
    %66 = arith.truncf %65 : vector<8x256xf32> to vector<8x256xbf16>
    %c0_27 = arith.constant 0 : index
    %c0_28 = arith.constant 0 : index
    %67 = vector.load %arg13[%c0_27, %c0_28] : memref<256x512xbf16, #tpu.memory_space<vmem>>, vector<256x512xbf16>
    %cst_29 = arith.constant dense<0.000000e+00> : vector<8x512xf32>
    %68 = tpu.matmul %66, %67, %cst_29 {dimension_numbers = #tpu.dot_dimension_numbers<[1], [0], [0], [1], [0, 0, 1, 1], [], []>} : vector<8x256xbf16>, vector<256x512xbf16>, vector<8x512xf32> -> vector<8x512xf32>
    %c0_30 = arith.constant 0 : index
    %c0_31 = arith.constant 0 : index
    %69 = vector.load %arg14[%c0_30, %c0_31] : memref<1x512xf32, #tpu.memory_space<vmem>>, vector<1x512xf32>
    %70 = vector.broadcast %69 : vector<1x512xf32> to vector<8x512xf32>
    %71 = arith.addf %68, %70 : vector<8x512xf32>
    %cst_32 = arith.constant 0.000000e+00 : f32
    %72 = vector.broadcast %cst_32 : f32 to vector<8x512xf32>
    %73 = arith.maximumf %71, %72 : vector<8x512xf32>
    %74 = arith.truncf %73 : vector<8x512xf32> to vector<8x512xbf16>
    %c0_33 = arith.constant 0 : index
    %c0_34 = arith.constant 0 : index
    %75 = vector.load %arg15[%c0_33, %c0_34] : memref<512x256xbf16, #tpu.memory_space<vmem>>, vector<512x256xbf16>
    %cst_35 = arith.constant dense<0.000000e+00> : vector<8x256xf32>
    %76 = tpu.matmul %74, %75, %cst_35 {dimension_numbers = #tpu.dot_dimension_numbers<[1], [0], [0], [1], [0, 0, 1, 1], [], []>} : vector<8x512xbf16>, vector<512x256xbf16>, vector<8x256xf32> -> vector<8x256xf32>
    %c0_36 = arith.constant 0 : index
    %c0_37 = arith.constant 0 : index
    %77 = vector.load %arg16[%c0_36, %c0_37] : memref<1x256xf32, #tpu.memory_space<vmem>>, vector<1x256xf32>
    %78 = vector.broadcast %77 : vector<1x256xf32> to vector<8x256xf32>
    %79 = arith.addf %76, %78 : vector<8x256xf32>
    %80 = arith.addf %42, %79 : vector<8x256xf32>
    %c0_38 = arith.constant 0 : index
    %c0_39 = arith.constant 0 : index
    %c0_40 = arith.constant 0 : index
    %81 = vector.load %arg18[%c0_38, %c0_39, %c0_40] : memref<1x8x256xf32, #tpu.memory_space<vmem>>, vector<1x8x256xf32>
    %82 = vector.shape_cast %81 : vector<1x8x256xf32> to vector<8x256xf32>
    %83 = vector.shape_cast %80 : vector<8x256xf32> to vector<1x8x256xf32>
    tpu.vector_store %arg18[%c0_38, %c0_39, %c0_40], %83 {strides = array<i32>} : memref<1x8x256xf32, #tpu.memory_space<vmem>>, vector<1x8x256xf32>,
    return
  }
  func.func @transform_0(%arg0: i32, %arg1: i32) -> (i32, i32, i32) {
    %c0_i32 = arith.constant 0 : i32
    %c0_i32_0 = arith.constant 0 : i32
    %c0_i32_1 = arith.constant 0 : i32
    return %arg0, %c0_i32, %c0_i32_0 : i32, i32, i32
  }
  func.func @transform_1(%arg0: i32, %arg1: i32) -> (i32, i32) {
    %c0_i32 = arith.constant 0 : i32
    %c0_i32_0 = arith.constant 0 : i32
    %c0_i32_1 = arith.constant 0 : i32
    return %c0_i32, %c0_i32_0 : i32, i32
  }
  func.func @transform_2(%arg0: i32, %arg1: i32) -> (i32, i32) {
    %c0_i32 = arith.constant 0 : i32
    %c0_i32_0 = arith.constant 0 : i32
    %c0_i32_1 = arith.constant 0 : i32
    return %c0_i32, %c0_i32_0 : i32, i32
  }
  func.func @transform_3(%arg0: i32, %arg1: i32) -> (i32, i32) {
    %c0_i32 = arith.constant 0 : i32
    %c0_i32_0 = arith.constant 0 : i32
    %c0_i32_1 = arith.constant 0 : i32
    return %c0_i32, %c0_i32_0 : i32, i32
  }
  func.func @transform_4(%arg0: i32, %arg1: i32) -> (i32, i32) {
    %c0_i32 = arith.constant 0 : i32
    %c0_i32_0 = arith.constant 0 : i32
    %c0_i32_1 = arith.constant 0 : i32
    return %c0_i32, %c0_i32_0 : i32, i32
  }
  func.func @transform_5(%arg0: i32, %arg1: i32) -> (i32, i32) {
    %c0_i32 = arith.constant 0 : i32
    %c0_i32_0 = arith.constant 0 : i32
    %c0_i32_1 = arith.constant 0 : i32
    return %c0_i32, %c0_i32_0 : i32, i32
  }
  func.func @transform_6(%arg0: i32, %arg1: i32) -> (i32, i32) {
    %c0_i32 = arith.constant 0 : i32
    %c0_i32_0 = arith.constant 0 : i32
    %c0_i32_1 = arith.constant 0 : i32
    return %c0_i32, %c0_i32_0 : i32, i32
  }
  func.func @transform_7(%arg0: i32, %arg1: i32) -> (i32, i32) {
    %c0_i32 = arith.constant 0 : i32
    %c0_i32_0 = arith.constant 0 : i32
    %c0_i32_1 = arith.constant 0 : i32
    return %c0_i32, %c0_i32_0 : i32, i32
  }
  func.func @transform_8(%arg0: i32, %arg1: i32) -> (i32, i32) {
    %c0_i32 = arith.constant 0 : i32
    %c0_i32_0 = arith.constant 0 : i32
    %c0_i32_1 = arith.constant 0 : i32
    return %c0_i32, %c0_i32_0 : i32, i32
  }
  func.func @transform_9(%arg0: i32, %arg1: i32) -> (i32, i32) {
    %c0_i32 = arith.constant 0 : i32
    %c0_i32_0 = arith.constant 0 : i32
    %c0_i32_1 = arith.constant 0 : i32
    return %c0_i32, %c0_i32_0 : i32, i32
  }
  func.func @transform_10(%arg0: i32, %arg1: i32) -> (i32, i32) {
    %c0_i32 = arith.constant 0 : i32
    %c0_i32_0 = arith.constant 0 : i32
    %c0_i32_1 = arith.constant 0 : i32
    return %c0_i32, %c0_i32_0 : i32, i32
  }
  func.func @transform_11(%arg0: i32, %arg1: i32) -> (i32, i32) {
    %c0_i32 = arith.constant 0 : i32
    %c0_i32_0 = arith.constant 0 : i32
    %c0_i32_1 = arith.constant 0 : i32
    return %c0_i32, %c0_i32_0 : i32, i32
  }
  func.func @transform_12(%arg0: i32, %arg1: i32) -> (i32, i32) {
    %c0_i32 = arith.constant 0 : i32
    %c0_i32_0 = arith.constant 0 : i32
    %c0_i32_1 = arith.constant 0 : i32
    return %c0_i32, %c0_i32_0 : i32, i32
  }
  func.func @transform_13(%arg0: i32, %arg1: i32) -> (i32, i32) {
    %c0_i32 = arith.constant 0 : i32
    %c0_i32_0 = arith.constant 0 : i32
    %c0_i32_1 = arith.constant 0 : i32
    return %c0_i32, %c0_i32_0 : i32, i32
  }
  func.func @transform_14(%arg0: i32, %arg1: i32) -> (i32, i32) {
    %c0_i32 = arith.constant 0 : i32
    %c0_i32_0 = arith.constant 0 : i32
    %c0_i32_1 = arith.constant 0 : i32
    return %c0_i32, %c0_i32_0 : i32, i32
  }
  func.func @transform_15(%arg0: i32, %arg1: i32) -> (i32, i32, i32) {
    %c0_i32 = arith.constant 0 : i32
    %c0_i32_0 = arith.constant 0 : i32
    return %arg0, %arg1, %c0_i32 : i32, i32, i32
  }
  func.func @transform_16(%arg0: i32, %arg1: i32) -> (i32, i32, i32) {
    %c0_i32 = arith.constant 0 : i32
    %c0_i32_0 = arith.constant 0 : i32
    return %arg0, %arg1, %c0_i32 : i32, i32, i32
  }
}

</mosaic_0001>

<bundles_post_ra>
// kernel: tpu_custom_call.1
= control target key start
LH: loop header
LB: loop body
LE: loop exit
PB: predicated region body
PF: predicated region fallthrough
CT: control target
= control target key end

     0   :  { %6 = vsyncpa [#allocation3], 0  ;;  %s341_s0 = inlined_call_operand.hbm [shape: f32[8,128], index: 0, kind: input, shape index: {}]   ;;  %s342_s1 = inlined_call_operand.hbm [shape: f32[8,128], index: 1, kind: output, shape index: {}]  }
   0x1   :  { %7 = vsyncpa [#allocation4], 0  ;;  %s262_s6 = smov 0  }
   0x2 LB: > { %s145_s7 = sadd.s32 4294967295, %s248_s6   ;;  %p146_p0 = scmp.ge.s32.totalorder %s248_s6, 1  ;;  %s248_s6 = sphi %s262_s6, %s13_s6  }
   0x3   : > { %p60_p1 = scmp.lt.s32.totalorder %s248_s6, 3  ;;  %p276_p3 = scmp.eq.s32.totalorder %s145_s7, 0 }
   0x4   : > { %s250_s10 = smov [#allocation2]   ;;  %s180_s15 = scalar_lea.hbm %s341_s0, 128 }
   0x5   : > { %p270_p2 = pnand %p146_p0, %p60_p1  ;;  %s73_s11 = sshll.u32 %s250_s10, 4  ;;  %s74_s11 = int_to_ptr.vmem [resolvable:$true] %s73_s11 }
   0x6   : > { %s347_s9 = scalar_select %p276_p3, 1, 0 }
   0x7   : > { %s346_s8 = scalar_select %p270_p2, 1, 0 }
   0x8   : > { %p162_p4 = pneg %p270_p2  ;;  %p181_p6 = scmp.ne.s32.totalorder %s341_s0, %s180_s15 }
   0x9   : > { %p187_p10 = scmp.lt.u32.totalorder %s180_s15, %s341_s0 }
   0xa   : > { %p284_p5 = pnand %p276_p3, %p162_p4 }
   0xc   : > { %p182_p7 = pneg %p284_p5 }
   0xe   : > { %p183_p8 = pnand %p182_p7, %p181_p6 }
  0x10   : > { %p184_p9 = pneg %p183_p8 }
  0x12   : > { %p189_p11 = pnand %p187_p10, %p184_p9 }
  0x14   : > { %192 = shalt.err (!%p189_p11)
}
  0x15   : > { %s193_s20 = scalar_lea.vmem %s74_s11, 128  ;;  %p201_p1 = scmp.lt.s32.totalorder %s74_s11, %s74_s11 }
  0x16   : > { %p194_p12 = scmp.ne.s32.totalorder %s74_s11, %s193_s20  ;;  %p202_p4 = scmp.lt.s32.totalorder %s193_s20, %s193_s20 }
  0x18   : > { %p196_p13 = pnand %p194_p12, %p182_p7  ;;  %p203_p3 = por %p202_p4, %p201_p1 }
  0x1a   : > { %p197_p0 = pneg %p196_p13 }
  0x1c   : > { %p204_p2 = pnand %p203_p3, %p197_p0 }
  0x1e   : > { %207 = shalt.err (!%p204_p2)
}
  0x1f   : > { %165 = dma.hbm_to_vmem [thread:$0]  (!%p284_p5), %s341_s0, 128, %s74_s11, [#allocation3]  }
  0x20   : > { %p349_p6 = scmp.ne.s32.totalorder %s346_s8, 0 }
  0x21   : > { %p350_p8 = scmp.ne.s32.totalorder (!%p349_p6), %s347_s9, 0 }
  0x22   : > { %86 = sbr.rel (%p349_p6) target bundleno = 67 (0x43), region = 24 }
  0x29   : > { %239 = dma.done.wait (%p350_p8), [#allocation3], 128  }
  0x2a   : > { %241 = vsyncadd (%p350_p8), [#allocation3], 4294967168  ;;  %s251_s23 = smov [#allocation5]   ;;  %v96_v0 = vld [vmem:[#allocation2] sm:$0xff]  ;;  %p312_p2 = scmp.eq.s32.totalorder %s145_s7, 1 }
  0x2b   : > { %s106_s24 = sshll.u32 %s251_s23, 4  ;;  %v97_v1 = vadd.f32 1.0, %v96_v0  ;;  %s107_s24 = int_to_ptr.vmem [resolvable:$true] %s106_s24 }
  0x2c   : > { %s208_s26 = scalar_lea.vmem %s107_s24, 128  ;;  %p215_p9 = scmp.lt.s32.totalorder %s107_s24, %s107_s24 }
  0x2d   : > { %98 = vst [vmem:[#allocation5] sm:$0xff] %v97_v1  ;;  %p209_p3 = scmp.ne.s32.totalorder %s107_s24, %s208_s26  ;;  %p216_p10 = scmp.lt.s32.totalorder %s208_s26, %s208_s26 }
  0x2f   : > { %p210_p5 = pnand %p209_p3, %p312_p2  ;;  %p217_p11 = por %p216_p10, %p215_p9 }
  0x31   : > { %p211_p7 = pneg %p210_p5 }
  0x33   : > { %p218_p12 = pnand %p217_p11, %p211_p7 }
  0x35   : > { %221 = shalt.err (!%p218_p12)
}
  0x36   : > { %s222_s29 = scalar_lea.hbm %s342_s1, 128 }
  0x37   : > { %p223_p13 = scmp.ne.s32.totalorder %s342_s1, %s222_s29  ;;  %p228_p4 = scmp.lt.u32.totalorder %s222_s29, %s342_s1 }
  0x39   : > { %p224_p0 = pnand %p223_p13, %p312_p2 }
  0x3b   : > { %p225_p1 = pneg %p224_p0 }
  0x3d   : > { %p230_p6 = pnand %p228_p4, %p225_p1 }
  0x3f   : > { %233 = shalt.err (!%p230_p6)
}
  0x40   : > { %159 = dma.vmem_to_hbm [thread:$0]  (%p312_p2), %s107_s24, 128, %s342_s1, [#allocation4]  }
  0x41   : > { %243 = dma.done.wait (%p312_p2), [#allocation4], 128  }
  0x42   : > { %245 = vsyncadd (%p312_p2), [#allocation4], 4294967168 }
  0x43 PF: > { %s13_s6 = sadd.s32 1, %s248_s6  }
  0x44   : > { %p10_p8 = scmp.ge.s32.totalorder %s13_s6, 4  }
  0x46   :  { %12 = sbr.rel (!%p10_p8) target bundleno = 2 (0x2), region = 53 }
  0x4d   :  { %119 = vsyncpa [#allocation3], 1 }
  0x4e   :  { %121 = vsyncpa [#allocation3 + $0x1], 1 }
  0x4f   :  { %122 = vsyncpa [#allocation4], 1 }
  0x50   :  { %124 = vsyncpa [#allocation4 + $0x1], 1 }

// kernel: tpu_custom_call.1
= control target key start
LH: loop header
LB: loop body
LE: loop exit
PB: predicated region body
PF: predicated region fallthrough
CT: control target
= control target key end

     0   :  { %s4837_s0 = inlined_call_operand.hbm [shape: f32[2,8,256], index: 0, kind: input, shape index: {}]   ;;  %s4838_s1 = inlined_call_operand.vmem [shape: f32[1,256], index: 1, kind: input, shape index: {}]   ;;  %s4839_s2 = inlined_call_operand.hbm [shape: f32[1,256], index: 2, kind: input, shape index: {}]   ;;  %s4840_s3 = inlined_call_operand.hbm [shape: bf16[256,256], index: 3, kind: input, shape index: {}]   ;;  %s4841_s4 = inlined_call_operand.hbm [shape: f32[1,256], index: 4, kind: input, shape index: {}]   ;;  %s4842_s5 = inlined_call_operand.hbm [shape: bf16[256,512], index: 5, kind: input, shape index: {}]   ;;  %s4843_s6 = inlined_call_operand.vmem [shape: f32[1,512], index: 6, kind: input, shape index: {}]   ;;  %s4844_s7 = inlined_call_operand.hbm [shape: bf16[256,256], index: 7, kind: input, shape index: {}]   ;;  %s4845_s8 = inlined_call_operand.vmem [shape: f32[1,256], index: 8, kind: input, shape index: {}]   ;;  %s4846_s9 = inlined_call_operand.vmem [shape: f32[1,256], index: 9, kind: input, shape index: {}]   ;;  %s4847_s10 = inlined_call_operand.vmem [shape: f32[1,256], index: 10, kind: input, shape index: {}]   ;;  %s4848_s11 = inlined_call_operand.hbm [shape: bf16[256,512], index: 11, kind: input, shape index: {}]   ;;  %s4849_s12 = inlined_call_operand.vmem [shape: f32[1,512], index: 12, kind: input, shape index: {}]   ;;  %s4850_s13 = inlined_call_operand.hbm [shape: bf16[512,256], index: 13, kind: input, shape index: {}]   ;;  %s4851_s14 = inlined_call_operand.vmem [shape: f32[1,256], index: 14, kind: input, shape index: {}]   ;;  %s4852_s15 = inlined_call_operand.vmem [shape: s8[2,8,8], index: 15, kind: input, shape index: {}]   ;;  %s4853_s16 = inlined_call_operand.hbm [shape: f32[2,8,256], index: 16, kind: output, shape index: {}]  }
   0x1   :  { %4864 = sst [smem:[#allocation25_spill]] %s4837_s0 }
   0x2   :  { %4865 = sst [smem:[#allocation26_spill]] %s4838_s1 }
   0x3   :  { %4866 = sst [smem:[#allocation27_spill]] %s4839_s2 }
   0x4   :  { %4867 = sst [smem:[#allocation28_spill]] %s4841_s4 }
   0x5   :  { %4868 = sst [smem:[#allocation29_spill]] %s4843_s6 }
   0x6   :  { %4869 = sst [smem:[#allocation30_spill]] %s4845_s8 }
   0x7   :  { %4870 = sst [smem:[#allocation31_spill]] %s4846_s9 }
   0x8   :  { %4871 = sst [smem:[#allocation32_spill]] %s4847_s10 }
   0x9   :  { %4872 = sst [smem:[#allocation33_spill]] %s4849_s12 }
   0xa   :  { %4873 = sst [smem:[#allocation34_spill]] %s4851_s14 }
   0xb   :  { %4874 = sst [smem:[#allocation35_spill]] %s4852_s15 }
   0xc   :  { %4875 = sst [smem:[#allocation36_spill]] %s4853_s16 }
   0xd   :  { %21 = vsyncpa [#allocation5], 0 }
   0xe   :  { %23 = vsyncpa [#allocation5 + $0x1], 0 }
   0xf   :  { %24 = vsyncpa [#allocation8], 0 }
  0x10   :  { %25 = vsyncpa [#allocation11], 0 }
  0x11   :  { %26 = vsyncpa [#allocation14], 0 }
  0x12   :  { %27 = vsyncpa [#allocation17], 0 }
  0x13   :  { %28 = vsyncpa [#allocation6], 0 }
  0x14   :  { %30 = vsyncpa [#allocation6 + $0x1], 0  ;;  %s4272_s21 = smov 0   ;;  %s4274_s22 = smov 0  }
  0x15   :  { %s4276_s23 = smov 0   ;;  %s4278_s24 = smov 0  }
  0x16   :  { %s4280_s25 = smov 0   ;;  %s4282_s26 = smov 0  }
  0x17 LB: > { %s4855_s27 = sadd.s32 4294967295, %s4157_s26   ;;  %p3002_p0 = scmp.ge.s32.totalorder %s4157_s26, 1  ;;  %s4157_s26 = sphi %s4282_s26, %s36_s26   ;;  %s4153_s25 = sphi %s4280_s25, %s4912_s25   ;;  %s4149_s24 = sphi %s4278_s24, %s4911_s24   ;;  %s4145_s23 = sphi %s4276_s23, %s4910_s23   ;;  %s4141_s22 = sphi %s4274_s22, %s4909_s22   ;;  %s4137_s21 = sphi %s4272_s21, %s4908_s21  }
  0x18   : > { %p4306_p1 = scmp.eq.s32.totalorder %s4855_s27, 0  ;;  %p429_p2 = scmp.lt.s32.totalorder %s4157_s26, 3 }
  0x19   : > { %s4171_s30 = smov [#allocation7]   ;;  %s4172_s17 = smov [#allocation10]  }
  0x1a   : > { %s4876_s28 = scalar_select %p4306_p1, 1, 0 }
  0x1b   : > { %p4311_p3 = pnand %p3002_p0, %p429_p2  ;;  %s445_s0 = sshll.u32 %s4171_s30, 4  ;;  %s446_s0 = int_to_ptr.vmem [resolvable:$true] %s445_s0 }
  0x1c   : > { %s469_s18 = sshll.u32 %s4172_s17, 4  ;;  %s4173_s20 = smov [#allocation13]   ;;  %s4324_s18 = int_to_ptr.vmem [resolvable:$true] %s469_s18 }
  0x1d   : > { %s4877_s29 = scalar_select %p4311_p3, 1, 0 }
  0x1e   : > { %p3345_p5 = pneg %p4311_p3  ;;  %s4326_s27 = sshll.u32 %s4173_s20, 4  ;;  %s496_s27 = int_to_ptr.vmem [resolvable:$true] %s4326_s27 }
  0x1f   : > { %s4879_s2 = sld [smem:[#allocation27_spill]] }
  0x20   : > { %p4320_p6 = pnand %p3345_p5, %p4306_p1 }
  0x22   : > { %p4336_p8 = pneg %p4320_p6 }
  0x25   : > { %s3821_s30 = scalar_lea.hbm %s4879_s2, 32 }
  0x26   : > { %p3822_p7 = scmp.ne.s32.totalorder %s4879_s2, %s3821_s30  ;;  %p3828_p11 = scmp.lt.u32.totalorder %s3821_s30, %s4879_s2 }
  0x28   : > { %p3824_p9 = pnand %p4336_p8, %p3822_p7 }
  0x2a   : > { %p3825_p10 = pneg %p3824_p9 }
  0x2c   : > { %p3830_p12 = pnand %p3828_p11, %p3825_p10 }
  0x2e   : > { %3833 = shalt.err (!%p3830_p12)
}
  0x2f   : > { %s3834_s14 = scalar_lea.vmem %s446_s0, 32  ;;  %p3842_p5 = scmp.lt.s32.totalorder %s446_s0, %s446_s0 }
  0x30   : > { %p3835_p13 = scmp.ne.s32.totalorder %s446_s0, %s3834_s14  ;;  %p3843_p4 = scmp.lt.s32.totalorder %s3834_s14, %s3834_s14 }
  0x32   : > { %p3837_p0 = pnand %p3835_p13, %p4336_p8  ;;  %p3844_p3 = por %p3843_p4, %p3842_p5 }
  0x34   : > { %p3838_p2 = pneg %p3837_p0 }
  0x36   : > { %p3845_p1 = pnand %p3844_p3, %p3838_p2 }
  0x38   : > { %3848 = shalt.err (!%p3845_p1)
}
  0x39   : > { %3348 = dma.hbm_to_vmem [thread:$0]  (!%p4320_p6), %s4879_s2, 32, %s446_s0, [#allocation8]  }
  0x3a   : > { %s4881_s4 = sld [smem:[#allocation28_spill]] }
  0x40   : > { %s3849_s30 = scalar_lea.hbm %s4881_s4, 32 }
  0x41   : > { %p3850_p7 = scmp.ne.s32.totalorder %s4881_s4, %s3849_s30  ;;  %p3856_p1 = scmp.lt.u32.totalorder %s3849_s30, %s4881_s4 }
  0x43   : > { %p3852_p9 = pnand %p3850_p7, %p4336_p8 }
  0x45   : > { %p3853_p4 = pneg %p3852_p9 }
  0x47   : > { %p3858_p3 = pnand %p3856_p1, %p3853_p4 }
  0x49   : > { %3861 = shalt.err (!%p3858_p3)
}
  0x4a   : > { %s3862_s0 = scalar_lea.vmem %s4324_s18, 32  ;;  %p3870_p13 = scmp.lt.s32.totalorder %s4324_s18, %s4324_s18 }
  0x4b   : > { %p3863_p10 = scmp.ne.s32.totalorder %s4324_s18, %s3862_s0  ;;  %p3871_p0 = scmp.lt.s32.totalorder %s3862_s0, %s3862_s0 }
  0x4d   : > { %p3865_p11 = pnand %p3863_p10, %p4336_p8  ;;  %p3872_p2 = por %p3871_p0, %p3870_p13 }
  0x4f   : > { %p3866_p12 = pneg %p3865_p11 }
  0x51   : > { %p3873_p5 = pnand %p3872_p2, %p3866_p12 }
  0x53   : > { %3876 = shalt.err (!%p3873_p5)
}
  0x54   : > { %3354 = dma.hbm_to_vmem [thread:$0]  (!%p4320_p6), %s4881_s4, 32, %s4324_s18, [#allocation11]  }
  0x55   : > { %s3877_s9 = scalar_lea.hbm %s4844_s7, 4096 }
  0x56   : > { %p3878_p7 = scmp.ne.s32.totalorder %s4844_s7, %s3877_s9  ;;  %p3884_p1 = scmp.lt.u32.totalorder %s3877_s9, %s4844_s7 }
  0x58   : > { %p3880_p9 = pnand %p3878_p7, %p4336_p8 }
  0x5a   : > { %p3881_p4 = pneg %p3880_p9 }
  0x5c   : > { %p3886_p3 = pnand %p3884_p1, %p3881_p4 }
  0x5e   : > { %3889 = shalt.err (!%p3886_p3)
}
  0x5f   : > { %s3890_s0 = scalar_lea.vmem %s496_s27, 4096  ;;  %p3898_p13 = scmp.lt.s32.totalorder %s496_s27, %s496_s27 }
  0x60   : > { %p3891_p10 = scmp.ne.s32.totalorder %s496_s27, %s3890_s0  ;;  %p3899_p0 = scmp.lt.s32.totalorder %s3890_s0, %s3890_s0 }
  0x62   : > { %p3893_p11 = pnand %p3891_p10, %p4336_p8  ;;  %p3900_p2 = por %p3899_p0, %p3898_p13 }
  0x64   : > { %p3894_p12 = pneg %p3893_p11 }
  0x66   : > { %p3901_p5 = pnand %p3900_p2, %p3894_p12 }
  0x68   : > { %3904 = shalt.err (!%p3901_p5)
}
  0x69   : > { %s4861_s18 = smov 128   ;;  %s4862_s6 = smov 8  }
  0x6a   : > { %3360 = dma.hbm_to_vmem [thread:$0]  (!%p4320_p6), %s4844_s7, 4096, %s496_s27, [#allocation14], %s4861_s18, %s4861_s18, %s4862_s6  }
  0x6b   : > { %s4176_s12 = smov [#allocation9]   ;;  %s4177_s16 = smov [#allocation12]  }
  0x6c   : > { %s455_s9 = sshll.u32 %s4176_s12, 4  ;;  %s479_s30 = sshll.u32 %s4177_s16, 4  ;;  %s456_s9 = int_to_ptr.vmem [resolvable:$true] %s455_s9  ;;  %s480_s30 = int_to_ptr.vmem [resolvable:$true] %s479_s30 }
  0x6d   : > { %s3905_s0 = scalar_lea.hbm %s4840_s3, 4096 }
  0x6e   : > { %p3906_p7 = scmp.ne.s32.totalorder %s4840_s3, %s3905_s0  ;;  %p3912_p1 = scmp.lt.u32.totalorder %s3905_s0, %s4840_s3 }
  0x70   : > { %p3908_p9 = pnand %p3906_p7, %p4336_p8 }
  0x72   : > { %p3909_p4 = pneg %p3908_p9 }
  0x74   : > { %p3914_p3 = pnand %p3912_p1, %p3909_p4 }
  0x76   : > { %3917 = shalt.err (!%p3914_p3)
}
  0x77   : > { %s3918_s27 = scalar_lea.vmem %s456_s9, 4096  ;;  %p3926_p13 = scmp.lt.s32.totalorder %s456_s9, %s456_s9 }
  0x78   : > { %p3919_p10 = scmp.ne.s32.totalorder %s456_s9, %s3918_s27  ;;  %p3927_p0 = scmp.lt.s32.totalorder %s3918_s27, %s3918_s27 }
  0x7a   : > { %p3921_p11 = pnand %p3919_p10, %p4336_p8  ;;  %p3928_p2 = por %p3927_p0, %p3926_p13 }
  0x7c   : > { %p3922_p12 = pneg %p3921_p11 }
  0x7e   : > { %p3929_p5 = pnand %p3928_p2, %p3922_p12 }
  0x80   : > { %3932 = shalt.err (!%p3929_p5)
}
  0x81   : > { %3351 = dma.hbm_to_vmem [thread:$0]  (!%p4320_p6), %s4840_s3, 4096, %s456_s9, [#allocation8], %s4861_s18, %s4861_s18, %s4862_s6  }
  0x82   : > { %s3933_s8 = scalar_lea.hbm %s4842_s5, 8192 }
  0x83   : > { %p3934_p7 = scmp.ne.s32.totalorder %s4842_s5, %s3933_s8  ;;  %p3940_p1 = scmp.lt.u32.totalorder %s3933_s8, %s4842_s5 }
  0x85   : > { %p3936_p9 = pnand %p3934_p7, %p4336_p8 }
  0x87   : > { %p3937_p4 = pneg %p3936_p9 }
  0x89   : > { %p3942_p3 = pnand %p3940_p1, %p3937_p4 }
  0x8b   : > { %3945 = shalt.err (!%p3942_p3)
}
  0x8c   : > { %s3946_s14 = scalar_lea.vmem %s480_s30, 8192  ;;  %p3954_p13 = scmp.lt.s32.totalorder %s480_s30, %s480_s30 }
  0x8d   : > { %p3947_p10 = scmp.ne.s32.totalorder %s480_s30, %s3946_s14  ;;  %p3955_p0 = scmp.lt.s32.totalorder %s3946_s14, %s3946_s14 }
  0x8f   : > { %p3949_p11 = pnand %p3947_p10, %p4336_p8  ;;  %p3956_p2 = por %p3955_p0, %p3954_p13 }
  0x91   : > { %p3950_p12 = pneg %p3949_p11 }
  0x93   : > { %p3957_p5 = pnand %p3956_p2, %p3950_p12 }
  0x95   : > { %3960 = shalt.err (!%p3957_p5)
}
  0x96   : > { %s4178_s9 = smov 256   ;;  %s4179_s0 = smov 16  }
  0x97   : > { %3357 = dma.hbm_to_vmem [thread:$0]  (!%p4320_p6), %s4842_s5, 8192, %s480_s30, [#allocation11], %s4178_s9, %s4178_s9, %s4179_s0  }
  0x98   : > { %s4180_s2 = smov [#allocation15]   ;;  %s4181_s15 = smov [#allocation16]  }
  0x99   : > { %s517_s4 = sshll.u32 %s4180_s2, 4  ;;  %s533_s8 = sshll.u32 %s4181_s15, 4  ;;  %s518_s4 = int_to_ptr.vmem [resolvable:$true] %s517_s4  ;;  %s534_s8 = int_to_ptr.vmem [resolvable:$true] %s533_s8 }
  0x9a   : > { %s3961_s16 = scalar_lea.hbm %s4848_s11, 8192 }
  0x9b   : > { %p3962_p7 = scmp.ne.s32.totalorder %s4848_s11, %s3961_s16  ;;  %p3968_p1 = scmp.lt.u32.totalorder %s3961_s16, %s4848_s11 }
  0x9d   : > { %p3964_p9 = pnand %p3962_p7, %p4336_p8 }
  0x9f   : > { %p3965_p4 = pneg %p3964_p9 }
  0xa1   : > { %p3970_p3 = pnand %p3968_p1, %p3965_p4 }
  0xa3   : > { %3973 = shalt.err (!%p3970_p3)
}
  0xa4   : > { %s3974_s30 = scalar_lea.vmem %s518_s4, 8192  ;;  %p3982_p13 = scmp.lt.s32.totalorder %s518_s4, %s518_s4 }
  0xa5   : > { %p3975_p10 = scmp.ne.s32.totalorder %s518_s4, %s3974_s30  ;;  %p3983_p0 = scmp.lt.s32.totalorder %s3974_s30, %s3974_s30 }
  0xa7   : > { %p3977_p11 = pnand %p3975_p10, %p4336_p8  ;;  %p3984_p2 = por %p3983_p0, %p3982_p13 }
  0xa9   : > { %p3978_p12 = pneg %p3977_p11 }
  0xab   : > { %p3985_p5 = pnand %p3984_p2, %p3978_p12 }
  0xad   : > { %3988 = shalt.err (!%p3985_p5)
}
  0xae   : > { %3363 = dma.hbm_to_vmem [thread:$0]  (!%p4320_p6), %s4848_s11, 8192, %s518_s4, [#allocation14], %s4178_s9, %s4178_s9, %s4179_s0  }
  0xaf   : > { %s3989_s2 = scalar_lea.hbm %s4850_s13, 8192 }
  0xb0   : > { %p3990_p7 = scmp.ne.s32.totalorder %s4850_s13, %s3989_s2  ;;  %p3996_p1 = scmp.lt.u32.totalorder %s3989_s2, %s4850_s13 }
  0xb2   : > { %p3992_p9 = pnand %p3990_p7, %p4336_p8 }
  0xb4   : > { %p3993_p4 = pneg %p3992_p9 }
  0xb6   : > { %p3998_p3 = pnand %p3996_p1, %p3993_p4 }
  0xb8   : > { %4001 = shalt.err (!%p3998_p3)
}
  0xb9   : > { %s4002_s20 = scalar_lea.vmem %s534_s8, 8192  ;;  %p4010_p13 = scmp.lt.s32.totalorder %s534_s8, %s534_s8 }
  0xba   : > { %p4003_p10 = scmp.ne.s32.totalorder %s534_s8, %s4002_s20  ;;  %p4011_p0 = scmp.lt.s32.totalorder %s4002_s20, %s4002_s20 }
  0xbc   : > { %p4005_p11 = pnand %p4003_p10, %p4336_p8  ;;  %p4012_p2 = por %p4011_p0, %p4010_p13 }
  0xbe   : > { %p4006_p12 = pneg %p4005_p11 }
  0xc0   : > { %p4013_p5 = pnand %p4012_p2, %p4006_p12 }
  0xc2   : > { %4016 = shalt.err (!%p4013_p5)
}
  0xc3   : > { %s4882_s9 = smov 8   ;;  %s4883_s0 = smov 128  }
  0xc4   : > { %3366 = dma.hbm_to_vmem [thread:$0]  (!%p4320_p6), %s4850_s13, 8192, %s534_s8, [#allocation17], %s4883_s0, %s4883_s0, %s4882_s9  }
  0xc5   : > { %s3001_s19 = sadd.s32 4294967294, %s4157_s26   ;;  %s48_s17 = sadd.s32 1, %s4153_s25 }
  0xc6   : > { %s55_s30 = sadd.s32 1, %s4145_s23  ;;  %p50_p8 = scmp.ge.s32.totalorder %s48_s17, 2 }
  0xc7   : > { %p62_p7 = scmp.ne.s32.totalorder %s4145_s23, %s4141_s22  ;;  %p63_p9 = scmp.eq.s32.totalorder %s4157_s26, 0 }
  0xc8   : > { %p68_p4 = scmp.ne.s32.totalorder %s4141_s22, %s4137_s21  ;;  %s4914_s17 = smov (%p50_p8, %s48_s17), 0 }
  0xc9   : > { %p4485_p1 = por %p63_p9, %p62_p7  ;;  %p4885_p3 = scmp.ne.s32.totalorder %s4876_s28, 0 }
  0xca   : > { %s52_s1 = ssub.s32 %s4153_s25, %s4914_s17  ;;  %s4887_s18 = sadd.s32 4294967295, %s4157_s26  }
  0xcb   : > { %p4491_p6 = por %p4885_p3, %p68_p4  ;;  %p416_p10 = scmp.eq.s32.totalorder %s4887_s18, 1 }
  0xcc   : > { %p53_p11 = scmp.eq.s32.totalorder %s52_s1, 0  ;;  %p422_p12 = scmp.eq.s32.totalorder %s3001_s19, 1 }
  0xcd   : > { %p4499_p13 = por %p416_p10, %p62_p7  ;;  %p3382_p0 = scmp.lt.s32.totalorder %s4157_s26, 2 }
  0xce   : > { %s4505_s2 = scalar_select %p53_p11, %s4145_s23, %s55_s30  }
  0xcf   : > { %s4888_s6 = scalar_select %p4499_p13, 1, 0 }
  0xd0   : > { %p4507_p2 = por %p422_p12, %p68_p4  ;;  %s550_s10 = sand.u32 1, %s4145_s23  }
  0xd1   : > { %s3011_s12 = sshll.u32 %s550_s10, 4  ;;  %s3262_s16 = sshll.u32 %s4153_s25, 8 }
  0xd2   : > { %s4889_s15 = scalar_select %p4507_p2, 1, 0 }
  0xd3   : > { %s4890_s0 = sld [smem:[#allocation25_spill]]  ;;  %s554_s14 = scalar_lea.vmem [#allocation4], %s3011_s12 }
  0xd4   : > { %s562_s19 = sshll.u32 %s554_s14, 4  ;;  %p4522_p5 = pnand %p3382_p0, %p4485_p1  ;;  %s4518_s19 = int_to_ptr.vmem [resolvable:$true] %s562_s19 }
  0xd5   : > { %s551_s1 = scalar_lea.sflag [#allocation5], %s550_s10 }
  0xd6   : > { %p4019_p7 = pneg %p4522_p5 }
  0xd9   : > { %s4516_s4 = scalar_lea.hbm %s4890_s0, %s3262_s16  ;;  %s4022_s20 = scalar_lea.hbm %s4890_s0, 512 }
  0xda   : > { %s4017_s18 = scalar_lea.hbm %s4516_s4, 256  ;;  %p4023_p1 = scmp.lt.u32.totalorder %s4516_s4, %s4890_s0 }
  0xdb   : > { %p4018_p8 = scmp.ne.s32.totalorder %s4516_s4, %s4017_s18  ;;  %p4024_p3 = scmp.lt.u32.totalorder %s4022_s20, %s4017_s18 }
  0xdc   : > { %p4026_p11 = scmp.lt.u32.totalorder %s4017_s18, %s4516_s4 }
  0xdd   : > { %p4020_p9 = pnand %p4019_p7, %p4018_p8  ;;  %p4025_p10 = por %p4024_p3, %p4023_p1 }
  0xdf   : > { %p4021_p4 = pneg %p4020_p9  ;;  %p4027_p12 = por %p4026_p11, %p4025_p10 }
  0xe1   : > { %p4028_p0 = pnand %p4027_p12, %p4021_p4 }
  0xe3   : > { %4031 = shalt.err (!%p4028_p0)
}
  0xe4   : > { %s4032_s10 = scalar_lea.vmem %s4518_s19, 256  ;;  %s4182_s14 = smov [#allocation4]  }
  0xe5   : > { %p4033_p8 = scmp.ne.s32.totalorder %s4518_s19, %s4032_s10  ;;  %s4037_s12 = sshll.u32 %s4182_s14, 4  ;;  %s4038_s12 = int_to_ptr.vmem [resolvable:$false] %s4037_s12 }
  0xe6   : > { %s4039_s16 = scalar_lea.vmem %s4038_s12, 512  ;;  %p4040_p13 = scmp.lt.s32.totalorder %s4518_s19, %s4038_s12 }
  0xe7   : > { %p4035_p9 = pnand %p4033_p8, %p4019_p7  ;;  %p4041_p1 = scmp.lt.s32.totalorder %s4039_s16, %s4032_s10 }
  0xe9   : > { %p4036_p2 = pneg %p4035_p9  ;;  %p4042_p3 = por %p4041_p1, %p4040_p13 }
  0xeb   : > { %p4043_p10 = pnand %p4042_p3, %p4036_p2 }
  0xed   : > { %4046 = shalt.err (!%p4043_p10)
}
  0xee   : > { %3370 = dma.hbm_to_vmem [thread:$0]  (!%p4522_p5), %s4516_s4, 256, %s4518_s19, %s551_s1  }
  0xef   : > { %p4892_p4 = scmp.ne.s32.totalorder %s4877_s29, 0 }
  0xf0   : > { %s4554_s18 = sand.u32 (!%p4892_p4), 1, %s4141_s22  }
  0xf1   : > { %581 = sbr.rel (%p4892_p4) target bundleno = 2813 (0xafd), region = 84  ;;  %s3015_s20 = sshll.u32 (!%p4892_p4), %s4554_s18, 4 }
  0xf2   : > { %s584_s27 = scalar_lea.sflag (!%p4892_p4), [#allocation5], %s4554_s18  ;;  %s587_s9 = scalar_lea.vmem (!%p4892_p4), [#allocation4], %s3015_s20 }
  0xf8   : > { %4112 = dma.done.wait (%p4491_p6), %s584_s27, 256  }
  0xf9   : > { %4114 = vsyncadd (%p4491_p6), %s584_s27, 4294967040  ;;  %p4893_p13 = scmp.ne.s32.totalorder %s4876_s28, 0 }
  0xfb   : > { %4116 = dma.done.wait (%p4893_p13), [#allocation8], 4128  }
  0xfc   : > { %4118 = vsyncadd (%p4893_p13), [#allocation8], 4294963168 }
  0xfd   : > { %4120 = dma.done.wait (%p4893_p13), [#allocation11], 8224  }
  0xfe   : > { %4122 = vsyncadd (%p4893_p13), [#allocation11], 4294959072 }
  0xff   : > { %4124 = dma.done.wait (%p4893_p13), [#allocation14], 12288  }
 0x100   : > { %4126 = vsyncadd (%p4893_p13), [#allocation14], 4294955008 }
 0x101   : > { %4128 = dma.done.wait (%p4893_p13), [#allocation17], 8192  }
 0x102   : > { %4130 = vsyncadd (%p4893_p13), [#allocation17], 4294959104  ;;  %p671_p6 = scmp.lt.s32.totalorder %s4149_s24, 1  ;;  %s4894_s30 = sld [smem:[#allocation35_spill]]  ;;  %v4587_v1 = vld [vmem:[%s587_s9] sm:$0xff]  ;;  %v4589_v2 = vld [vmem:[%s587_s9 + $0x8] sm:$0xff] }
 0x103   : > { %v691_v3 = vadd.f32 %v4589_v2, %v4587_v1  ;;  %v3477_v4 = vld [vmem:[#allocation12 + $0x4] ss:$16 sps:$4 sm:$0xff]   ;;  %v3479_v5 = vld [vmem:[#allocation12 + $0xc] ss:$16 sps:$4 sm:$0xff]   ;;  %v3481_v6 = vld [vmem:[#allocation12] ss:$16 sps:$4 sm:$0xff]  }
 0x104   : > { %s672_s29 = scalar_select %p671_p6, %s4149_s24, 1  ;;  %v3482_v7 = vld [vmem:[#allocation12 + $0x8] ss:$16 sps:$4 sm:$0xff]   ;;  %v3483_v8 = vld [vmem:[#allocation12 + $0x24] ss:$16 sps:$4 sm:$0xff]   ;;  %1150 = vmatprep.subr.bf16.mxu0 %v3477_v4  ;;  %1191 = vmatprep.subr.bf16.mxu1 %v3479_v5 }
 0x105   : > { %692 = vadd.xlane.f32.xlu0 %v691_v3  ;;  %1253 = vadd.xlane.f32.xlu1 %v691_v3  ;;  %v3485_v9 = vld [vmem:[#allocation12 + $0x2c] ss:$16 sps:$4 sm:$0xff]   ;;  %v3487_v10 = vld [vmem:[#allocation12 + $0x20] ss:$16 sps:$4 sm:$0xff]   ;;  %v3488_v11 = vld [vmem:[#allocation12 + $0x28] ss:$16 sps:$4 sm:$0xff]  }
 0x106   : > { %s3024_s8 = sshll.u32 %s672_s29, 1  ;;  %1151 = vmatpush1.bf16.msra.mxu0 %v3481_v6  ;;  %1192 = vmatpush1.bf16.msra.mxu1 %v3482_v7  ;;  %v3489_v12 = vld [vmem:[#allocation12 + $0x44] ss:$16 sps:$4 sm:$0xff]   ;;  %v3491_v13 = vld [vmem:[#allocation12 + $0x4c] ss:$16 sps:$4 sm:$0xff]   ;;  %s4895_s14 = sld [smem:[#allocation26_spill]] }
 0x107   : > { %1152 = vmatprep.subr.bf16.mxu0 %v3483_v8  ;;  %1193 = vmatprep.subr.bf16.mxu1 %v3485_v9  ;;  %v3493_v14 = vld [vmem:[#allocation12 + $0x40] ss:$16 sps:$4 sm:$0xff]   ;;  %v3494_v15 = vld [vmem:[#allocation12 + $0x48] ss:$16 sps:$4 sm:$0xff]   ;;  %v3495_v16 = vld [vmem:[#allocation12 + $0x64] ss:$16 sps:$4 sm:$0xff]  }
 0x108   : > { %s677_s1 = scalar_lea.vmem %s4894_s30, %s3024_s8  ;;  %v3497_v17 = vld [vmem:[#allocation12 + $0x6c] ss:$16 sps:$4 sm:$0xff]   ;;  %v3499_v18 = vld [vmem:[#allocation12 + $0x60] ss:$16 sps:$4 sm:$0xff]   ;;  %v3500_v19 = vld [vmem:[#allocation12 + $0x68] ss:$16 sps:$4 sm:$0xff]  }
 0x109   : > { %v4585_v0 = vld [vmem:[%s677_s1] sm:$0x3]  ;;  %v3501_v20 = vld [vmem:[#allocation12 + $0x84] ss:$16 sps:$4 sm:$0xff]   ;;  %v3505_v22 = vld [vmem:[#allocation12 + $0x80] ss:$16 sps:$4 sm:$0xff]  }
 0x10a   : > { %vm682_vm0 = vnez %v4585_v0  ;;  %1153 = vmatpush1.bf16.msra.mxu0 %v3487_v10  ;;  %1194 = vmatpush1.bf16.msra.mxu1 %v3488_v11  ;;  %v3503_v21 = vld [vmem:[#allocation12 + $0x8c] ss:$16 sps:$4 sm:$0xff]   ;;  %v3506_v23 = vld [vmem:[#allocation12 + $0x88] ss:$16 sps:$4 sm:$0xff]   ;;  %v3507_v24 = vld [vmem:[#allocation12 + $0xa4] ss:$16 sps:$4 sm:$0xff]  }
 0x10b   : > { %1154 = vmatprep.subr.bf16.mxu0 %v3489_v12  ;;  %1195 = vmatprep.subr.bf16.mxu1 %v3491_v13  ;;  %v3509_v25 = vld [vmem:[#allocation12 + $0xac] ss:$16 sps:$4 sm:$0xff]   ;;  %v3511_v26 = vld [vmem:[#allocation12 + $0xa0] ss:$16 sps:$4 sm:$0xff]   ;;  %v3512_v27 = vld [vmem:[#allocation12 + $0xa8] ss:$16 sps:$4 sm:$0xff]  }
 0x10c   : > { %v3513_v28 = vld [vmem:[#allocation12 + $0xc4] ss:$16 sps:$4 sm:$0xff]   ;;  %v3515_v29 = vld [vmem:[#allocation12 + $0xcc] ss:$16 sps:$4 sm:$0xff]   ;;  %v3517_v30 = vld [vmem:[#allocation12 + $0xc0] ss:$16 sps:$4 sm:$0xff]  }
 0x10d   : > { %v3518_v31 = vld [vmem:[#allocation12 + $0xc8] ss:$16 sps:$4 sm:$0xff]   ;;  %v3519_v46 = vld [vmem:[#allocation12 + $0xe4] ss:$16 sps:$4 sm:$0xff]   ;;  %v3521_v47 = vld [vmem:[#allocation12 + $0xec] ss:$16 sps:$4 sm:$0xff]  }
 0x10e   : > { %1155 = vmatpush1.bf16.msra.mxu0 %v3493_v14  ;;  %1196 = vmatpush1.bf16.msra.mxu1 %v3494_v15  ;;  %v3523_v48 = vld [vmem:[#allocation12 + $0xe0] ss:$16 sps:$4 sm:$0xff]   ;;  %v3524_v49 = vld [vmem:[#allocation12 + $0xe8] ss:$16 sps:$4 sm:$0xff]   ;;  %v3525_v50 = vld [vmem:[#allocation12 + $0x104] ss:$16 sps:$4 sm:$0xff]  }
 0x10f   : > { %1156 = vmatprep.subr.bf16.mxu0 %v3495_v16  ;;  %1197 = vmatprep.subr.bf16.mxu1 %v3497_v17  ;;  %v3527_v51 = vld [vmem:[#allocation12 + $0x10c] ss:$16 sps:$4 sm:$0xff]   ;;  %v3529_v52 = vld [vmem:[#allocation12 + $0x100] ss:$16 sps:$4 sm:$0xff]   ;;  %v3530_v53 = vld [vmem:[#allocation12 + $0x108] ss:$16 sps:$4 sm:$0xff]  }
 0x110   : > { %v3531_v54 = vld [vmem:[#allocation12 + $0x124] ss:$16 sps:$4 sm:$0xff]   ;;  %v3533_v55 = vld [vmem:[#allocation12 + $0x12c] ss:$16 sps:$4 sm:$0xff]   ;;  %v3535_v56 = vld [vmem:[#allocation12 + $0x120] ss:$16 sps:$4 sm:$0xff]  }
 0x111   : > { %v3536_v57 = vld [vmem:[#allocation12 + $0x128] ss:$16 sps:$4 sm:$0xff]   ;;  %v3537_v58 = vld [vmem:[#allocation12 + $0x144] ss:$16 sps:$4 sm:$0xff]   ;;  %v3539_v59 = vld [vmem:[#allocation12 + $0x14c] ss:$16 sps:$4 sm:$0xff]  }
 0x112   : > { %1157 = vmatpush1.bf16.msra.mxu0 %v3499_v18  ;;  %1198 = vmatpush1.bf16.msra.mxu1 %v3500_v19  ;;  %v3541_v60 = vld [vmem:[#allocation12 + $0x140] ss:$16 sps:$4 sm:$0xff]   ;;  %v3542_v61 = vld [vmem:[#allocation12 + $0x148] ss:$16 sps:$4 sm:$0xff]   ;;  %v3543_v62 = vld [vmem:[#allocation12 + $0x164] ss:$16 sps:$4 sm:$0xff]  }
 0x113   : > { %1158 = vmatprep.subr.bf16.mxu0 %v3501_v20  ;;  %1199 = vmatprep.subr.bf16.mxu1 %v3503_v21  ;;  %v3545_v63 = vld [vmem:[#allocation12 + $0x16c] ss:$16 sps:$4 sm:$0xff]   ;;  %v3547_v3 = vld [vmem:[#allocation12 + $0x160] ss:$16 sps:$4 sm:$0xff]   ;;  %v3548_v4 = vld [vmem:[#allocation12 + $0x168] ss:$16 sps:$4 sm:$0xff]  }
 0x114   : > { %v3549_v5 = vld [vmem:[#allocation12 + $0x184] ss:$16 sps:$4 sm:$0xff]   ;;  %v3551_v6 = vld [vmem:[#allocation12 + $0x18c] ss:$16 sps:$4 sm:$0xff]   ;;  %v3553_v7 = vld [vmem:[#allocation12 + $0x180] ss:$16 sps:$4 sm:$0xff]  }
 0x115   : > { %v3554_v8 = vld [vmem:[#allocation12 + $0x188] ss:$16 sps:$4 sm:$0xff]   ;;  %v3555_v9 = vld [vmem:[#allocation12 + $0x1a4] ss:$16 sps:$4 sm:$0xff]   ;;  %v3557_v10 = vld [vmem:[#allocation12 + $0x1ac] ss:$16 sps:$4 sm:$0xff]  }
 0x116   : > { %1159 = vmatpush1.bf16.msra.mxu0 %v3505_v22  ;;  %1200 = vmatpush1.bf16.msra.mxu1 %v3506_v23  ;;  %v3559_v11 = vld [vmem:[#allocation12 + $0x1a0] ss:$16 sps:$4 sm:$0xff]   ;;  %v3560_v12 = vld [vmem:[#allocation12 + $0x1a8] ss:$16 sps:$4 sm:$0xff]   ;;  %v3561_v13 = vld [vmem:[#allocation12 + $0x1c4] ss:$16 sps:$4 sm:$0xff]  }
 0x117   : > { %1160 = vmatprep.subr.bf16.mxu0 %v3507_v24  ;;  %1201 = vmatprep.subr.bf16.mxu1 %v3509_v25  ;;  %v3563_v14 = vld [vmem:[#allocation12 + $0x1cc] ss:$16 sps:$4 sm:$0xff]   ;;  %v3565_v15 = vld [vmem:[#allocation12 + $0x1c0] ss:$16 sps:$4 sm:$0xff]   ;;  %v3566_v16 = vld [vmem:[#allocation12 + $0x1c8] ss:$16 sps:$4 sm:$0xff]  }
 0x118   : > { %v3567_v17 = vld [vmem:[#allocation12 + $0x1e4] ss:$16 sps:$4 sm:$0xff]   ;;  %v3569_v18 = vld [vmem:[#allocation12 + $0x1ec] ss:$16 sps:$4 sm:$0xff]   ;;  %v3571_v19 = vld [vmem:[#allocation12 + $0x1e0] ss:$16 sps:$4 sm:$0xff]  }
 0x119   : > { %v3572_v20 = vld [vmem:[#allocation12 + $0x1e8] ss:$16 sps:$4 sm:$0xff]   ;;  %s4896_s29 = sld [smem:[#allocation29_spill]]  ;;  %s4661_s8 = scalar_lea.vmem [#allocation18], %s3015_s20 }
 0x11a   : > { %1161 = vmatpush1.bf16.msra.mxu0 %v3511_v26  ;;  %1202 = vmatpush1.bf16.msra.mxu1 %v3512_v27  ;;  %v715_v26 = vlaneseq  ;;  %s4667_s4 = smov 0  }
 0x11b   : > { %1162 = vmatprep.subr.bf16.mxu0 %v3513_v28  ;;  %1203 = vmatprep.subr.bf16.mxu1 %v3515_v29 }
 0x11e   : > { %1163 = vmatpush1.bf16.msra.mxu0 %v3517_v30  ;;  %1204 = vmatpush1.bf16.msra.mxu1 %v3518_v31 }
 0x11f   : > { %1164 = vmatprep.subr.bf16.mxu0 %v3519_v46  ;;  %1205 = vmatprep.subr.bf16.mxu1 %v3521_v47  ;;  %v689_v46 = vld [vmem:[%s4895_s14] sm:$0x3] }
 0x122   : > { %1165 = vmatpush1.bf16.msra.mxu0 %v3523_v48  ;;  %1206 = vmatpush1.bf16.msra.mxu1 %v3524_v49 }
 0x123   : > { %1166 = vmatprep.subr.bf16.mxu0 %v3525_v50  ;;  %1207 = vmatprep.subr.bf16.mxu1 %v3527_v51  ;;  %v690_v51 = vld [vmem:[#allocation7] sm:$0x3] }
 0x126   : > { %1167 = vmatpush1.bf16.msra.mxu0 %v3529_v52  ;;  %1208 = vmatpush1.bf16.msra.mxu1 %v3530_v53  ;;  %v1251_v52 = vld [vmem:[#allocation7] sm:$0x3] }
 0x127   : > { %1168 = vmatprep.subr.bf16.mxu0 %v3531_v54  ;;  %1209 = vmatprep.subr.bf16.mxu1 %v3533_v55 }
 0x12a   : > { %1169 = vmatpush1.bf16.msra.mxu0 %v3535_v56  ;;  %1210 = vmatpush1.bf16.msra.mxu1 %v3536_v57 }
 0x12b   : > { %1170 = vmatprep.subr.bf16.mxu0 %v3537_v58  ;;  %1211 = vmatprep.subr.bf16.mxu1 %v3539_v59 }
 0x12e   : > { %1171 = vmatpush1.bf16.msra.mxu0 %v3541_v60  ;;  %1212 = vmatpush1.bf16.msra.mxu1 %v3542_v61 }
 0x12f   : > { %1172 = vmatprep.subr.bf16.mxu0 %v3543_v62  ;;  %1213 = vmatprep.subr.bf16.mxu1 %v3545_v63 }
 0x132   : > { %1173 = vmatpush1.bf16.msra.mxu0 %v3547_v3  ;;  %1214 = vmatpush1.bf16.msra.mxu1 %v3548_v4 }
 0x133   : > { %1174 = vmatprep.subr.bf16.mxu0 %v3549_v5  ;;  %1215 = vmatprep.subr.bf16.mxu1 %v3551_v6 }
 0x136   : > { %1175 = vmatpush1.bf16.msra.mxu0 %v3553_v7  ;;  %1216 = vmatpush1.bf16.msra.mxu1 %v3554_v8 }
 0x137   : > { %1176 = vmatprep.subr.bf16.mxu0 %v3555_v9  ;;  %1217 = vmatprep.subr.bf16.mxu1 %v3557_v10 }
 0x13a   : > { %1177 = vmatpush1.bf16.msra.mxu0 %v3559_v11  ;;  %1218 = vmatpush1.bf16.msra.mxu1 %v3560_v12  ;;  %v808_v11 = vld [vmem:[%s4896_s29] sm:$0xf] }
 0x13b   : > { %1178 = vmatprep.subr.bf16.mxu0 %v3561_v13  ;;  %1219 = vmatprep.subr.bf16.mxu1 %v3563_v14 }
 0x13e   : > { %1179 = vmatpush1.bf16.msra.mxu0 %v3565_v15  ;;  %1220 = vmatpush1.bf16.msra.mxu1 %v3566_v16 }
 0x13f   : > { %1180 = vmatprep.subr.bf16.mxu0 %v3567_v17  ;;  %1221 = vmatprep.subr.bf16.mxu1 %v3569_v18 }
 0x142   : > { %1181 = vmatpush1.bf16.msra.mxu0 %v3571_v19  ;;  %1222 = vmatpush1.bf16.msra.mxu1 %v3572_v20 }
 0x192   : > { %v693_v32 = vpop.xlane.xlu0 %692  ;;  %v1254_v33 = vpop.xlane.xlu1 %1253 }
 0x193   : > { %v695_v34 = vmul.f32 0.00390625, %v693_v32  ;;  %v1256_v35 = vmul.f32 0.00390625, %v1254_v33  ;;  %v4614_v33 = vshrl.u32 %v715_v26, 7 }
 0x195   : > { %v4595_v36 = vsub.f32 %v4587_v1, %v695_v34  ;;  %v4598_v37 = vsub.f32 %v4589_v2, %v695_v34  ;;  %v4601_v38 = vsub.f32 %v4587_v1, %v1256_v35  ;;  %v4604_v39 = vsub.f32 %v4589_v2, %v1256_v35 }
 0x196   : > { %v820_v10 = vsub.s32 2, %v4614_v33  ;;  %v824_v12 = vsub.s32 3, %v4614_v33 }
 0x197   : > { %v698_v40 = vmul.f32 %v4595_v36, %v4595_v36  ;;  %v699_v41 = vmul.f32 %v4598_v37, %v4598_v37  ;;  %v1259_v42 = vmul.f32 %v4601_v38, %v4601_v38  ;;  %v1260_v43 = vmul.f32 %v4604_v39, %v4604_v39 }
 0x198   : > { %v821_v14 = vrot.slane %v808_v11, %v820_v10  ;;  %v825_v16 = vrot.slane %v808_v11, %v824_v12 }
 0x199   : > { %v700_v44 = vadd.f32 %v699_v41, %v698_v40  ;;  %v1261_v45 = vadd.f32 %v1260_v43, %v1259_v42  ;;  %v4617_v43 = vsub.s32 0, %v4614_v33 }
 0x19b   : > { %701 = vadd.xlane.f32.xlu0 %v700_v44  ;;  %1262 = vadd.xlane.f32.xlu1 %v1261_v45  ;;  %v4620_v44 = vsub.s32 1, %v4614_v33  ;;  %v1250_v45 = vld [vmem:[%s4895_s14] sm:$0x3]  ;;  %v718_v49 = vrot.slane %v689_v46, %v4617_v43  ;;  %v733_v57 = vrot.slane %v690_v51, %v4617_v43  ;;  %v1294_v60 = vrot.slane %v1251_v52, %v4617_v43 }
 0x19c   : > { %v1279_v47 = vrot.slane %v1250_v45, %v4617_v43  ;;  %v813_v13 = vrot.slane %v808_v11, %v4617_v43 }
 0x19d   : > { %v1283_v48 = vrot.slane %v1250_v45, %v4620_v44  ;;  %v722_v50 = vrot.slane %v689_v46, %v4620_v44  ;;  %v725_v55 = vmul.f32 %v718_v49, %v4595_v36  ;;  %v737_v58 = vrot.slane %v690_v51, %v4620_v44 }
 0x19e   : > { %v1286_v53 = vmul.f32 %v1279_v47, %v4601_v38  ;;  %v1298_v61 = vrot.slane %v1251_v52, %v4620_v44  ;;  %v817_v15 = vrot.slane %v808_v11, %v4620_v44 }
 0x19f   : > { %v1287_v54 = vmul.f32 %v1283_v48, %v4604_v39  ;;  %v726_v56 = vmul.f32 %v722_v50, %v4598_v37 }
 0x228   : > { %v702_v21 = vpop.xlane.xlu0 %701  ;;  %v1263_v23 = vpop.xlane.xlu1 %1262 }
 0x229   : > { %v704_v22 = vmul.f32 0.003921569, %v702_v21  ;;  %v1265_v24 = vmul.f32 0.003921569, %v1263_v23 }
 0x22b   : > { %3573 = vrsqrt.f32 %v704_v22  ;;  %vm1268_vm1 = vcmp.eq.f32.partialorder %v1265_v24, inf  ;;  %v1271_v29 = vand.u32 2147483648, %v1265_v24  ;;  %vm707_vm2 = vcmp.eq.f32.partialorder %v704_v22, inf }
 0x22c   : > { %3575 = vrsqrt.f32 %v1265_v24  ;;  %v710_v30 = vand.u32 2147483648, %v704_v22  ;;  %vm1270_vm3 = vcmp.eq.f32.partialorder %v1265_v24, 0.0  ;;  %vm709_vm4 = vcmp.eq.f32.partialorder %v704_v22, 0.0 }
 0x235   : > { %v3574_v25 = vpop.eup %3573 }
 0x236   : > { %v3576_v27 = vpop.eup %3575  ;;  %v706_v28 = vmul.f32 %v3574_v25, %v704_v22 }
 0x237   : > { %v1267_v31 = vmul.f32 %v3576_v27, %v1265_v24 }
 0x238   : > { %v708_v32 = vsel %vm707_vm2, %v704_v22, %v706_v28 }
 0x239   : > { %v711_v34 = vsel %vm709_vm4, %v710_v30, %v708_v32  ;;  %v1269_v35 = vsel %vm1268_vm1, %v1265_v24, %v1267_v31  ;;  %v4663_v31 = vmov 0.0   ;;  %v4665_v32 = vmov 0.0  }
 0x23a   : > { %v712_v40 = vadd.f32 1e-06, %v711_v34  ;;  %v1272_v41 = vsel %vm1270_vm3, %v1271_v29, %v1269_v35 }
 0x23b   : > { %v1273_v42 = vadd.f32 1e-06, %v1272_v41 }
 0x23c   : > { %3577 = vrcp.f32 %v712_v40 }
 0x23d   : > { %3579 = vrcp.f32 %v1273_v42 }
 0x246   : > { %v3578_v59 = vpop.eup %3577 }
 0x247   : > { %v3580_v62 = vpop.eup %3579  ;;  %v728_v63 = vmul.f32 %v3578_v59, %v726_v56  ;;  %v727_v3 = vmul.f32 %v3578_v59, %v725_v55 }
 0x248   : > { %v1288_v4 = vmul.f32 %v3580_v62, %v1286_v53  ;;  %v1289_v38 = vmul.f32 %v3580_v62, %v1287_v54 }
 0x249   : > { %v741_v5 = vadd.f32 %v737_v58, %v728_v63  ;;  %v740_v39 = vadd.f32 %v733_v57, %v727_v3 }
 0x24a   : > { %v4640_v6 = vadd.f32 %v1294_v60, %v1288_v4  ;;  %v4642_v36 = vadd.f32 %v1298_v61, %v1289_v38 }
 0x24b   : > { %v743_v37 = vpack.c.bf16 %v741_v5, %v741_v5  ;;  %v742_v7 = vpack.c.bf16 %v740_v39, %v740_v39 }
 0x24c   : > { %v1303_v8 = vpack.c.bf16 %v4640_v6, %v4640_v6  ;;  %v1304_v9 = vpack.c.bf16 %v4642_v36, %v4642_v36 }
 0x24d   : > { %1182 = vmatprep.mubr.bf16.mxu0 %v743_v37  ;;  %1223 = vmatprep.mubr.bf16.mxu1 %v743_v37 }
 0x24e   : > { %1183 = vmatmul.mubr.bf16.vlgmr.msra.gmra.mrb[0].mxu0 %v742_v7  ;;  %1224 = vmatmul.mubr.bf16.vlgmr.msra.gmra.mrb[0].mxu1 %v742_v7 }
 0x321   : > { %v1184_v17 = vpop.f32.mrb[0].mxu0  ;;  %v1225_v18 = vpop.f32.mrb[0].mxu1 }
 0x322   : > { %v1185_v19 = vadd.f32 %v1184_v17, %v813_v13  ;;  %v1226_v20 = vadd.f32 %v1225_v18, %v821_v14  ;;  %v1186_v21 = vpop.f32.mrb[1].mxu0  ;;  %v1227_v22 = vpop.f32.mrb[1].mxu1 }
 0x323   : > { %v1187_v23 = vadd.f32 %v1186_v21, %v817_v15  ;;  %v1228_v24 = vadd.f32 %v1227_v22, %v825_v16  ;;  %v1188_v25 = vpop.f32.mrb[2].mxu0  ;;  %v1229_v26 = vpop.f32.mrb[2].mxu1 }
 0x324   : > { %v1189_v27 = vpop.f32.mrb[3].mxu0  ;;  %v1230_v28 = vpop.f32.mrb[3].mxu1 }
 0x325   : > { %v3268_v29 = vpack.c.bf16 %v1187_v23, %v1185_v19  ;;  %v3273_v30 = vpack.c.bf16 %v1228_v24, %v1226_v20 }
 0x327   : > { %3269 = vst [vmem:[#allocation2] sm:$0xff] %v3268_v29   ;;  %3274 = vst [vmem:[#allocation3] sm:$0xff] %v3273_v30  }
 0x328 LB: >> { %1486 = vmatprep.mubr.bf16.mxu0 %v1304_v9  ;;  %v4183_v34 = vmov 0.0   ;;  %s3089_s20 = sshll.u32 %s4169_s4, 7  ;;  %s3108_s28 = sshll.u32 %s4169_s4, 2  ;;  %vm4184_vm5 = vmmov 0   ;;  %v4185_v38 = vmov 0   ;;  %vm1543_vm7 = vcmask 64512   ;;  %s4169_s4 = sphi %s4667_s4, %s1310_s4   ;;  %v4165_v32 = vphi %v4665_v32, %v4898_v32   ;;  %v4161_v31 = vphi %v4663_v31, %v4897_v31  }
 0x329   : >> { %3307 = vmatprep.subr.bf16.mxu1 %v4183_v34  ;;  %s4684_s19 = sshra.s32 %s3089_s20, 7  ;;  %s1496_s10 = scalar_lea.vmem [#allocation2], %s3108_s28  ;;  %3309 = vmatprep.mubr.msk.bf16.mxu1 %vm4184_vm5, %v4183_v34  ;;  %v1539_v5 = vsel %vm682_vm0, 16843009, %v4185_v38  ;;  %vm1562_vm8 = vcmask 1043456  }
 0x32a   : >> { %s3090_s30 = sshll.u32 %s4684_s19, 2  ;;  %s1350_s12 = scalar_lea.vmem [#allocation10], %s4684_s19  ;;  %v1540_v39 = vunpack.c.0.s8 %v1539_v5 }
 0x32b   : >> { %s1317_s1 = scalar_lea.vmem [#allocation9], %s3090_s30  ;;  %v3091_v59 = vld [vmem:[%s1350_s12] ss:$0 sm:$0xff]  ;;  %s1557_s16 = scalar_lea.vmem [#allocation3], %s3108_s28 }
 0x32c   : >> { %v3581_v35 = vld [vmem:[%s1317_s1 + $0x80] ss:$8 sps:$4 sm:$0xff]   ;;  %v3583_v41 = vld [vmem:[%s1317_s1 + $0x90] ss:$8 sps:$4 sm:$0xff]   ;;  %vm1541_vm6 = vcmp.ne.s32.totalorder %v1540_v39, 0  ;;  %s4702_s27 = scalar_lea.vmem [#allocation13], %s3089_s20 }
 0x32d   : >> { %v3582_v40 = vld [vmem:[%s1317_s1] ss:$8 sps:$4 sm:$0xff]   ;;  %3275 = vmatprep.subr.bf16.mxu0 %v3581_v35  ;;  %v3584_v42 = vld [vmem:[%s1317_s1 + $0x10] ss:$8 sps:$4 sm:$0xff]   ;;  %v3599_v24 = vld [vmem:[%s4702_s27 + $0x4] ss:$8 sps:$4 sm:$0xff]  }
 0x32e   : >> { %3276 = vmatpush3.bf16.msra.mxu0 %v3582_v40  ;;  %v3585_v45 = vld [vmem:[%s1317_s1 + $0xa0] ss:$8 sps:$4 sm:$0xff]   ;;  %v3587_v47 = vld [vmem:[%s1317_s1 + $0xb0] ss:$8 sps:$4 sm:$0xff]   ;;  %v3602_v30 = vld [vmem:[%s4702_s27 + $0x14] ss:$8 sps:$4 sm:$0xff]  }
 0x32f   : >> { %3277 = vmatprep.subr.bf16.mxu0 %v3583_v41  ;;  %v3586_v46 = vld [vmem:[%s1317_s1 + $0x20] ss:$8 sps:$4 sm:$0xff]   ;;  %v3588_v48 = vld [vmem:[%s1317_s1 + $0x30] ss:$8 sps:$4 sm:$0xff]   ;;  %v3605_v35 = vld [vmem:[%s4702_s27 + $0x24] ss:$8 sps:$4 sm:$0xff]  }
 0x330   : >> { %v3589_v49 = vld [vmem:[%s1317_s1 + $0xc0] ss:$8 sps:$4 sm:$0xff]   ;;  %v3591_v51 = vld [vmem:[%s1317_s1 + $0xd0] ss:$8 sps:$4 sm:$0xff]   ;;  %v3608_v41 = vld [vmem:[%s4702_s27 + $0x34] ss:$8 sps:$4 sm:$0xff]  }
 0x331   : >> { %v3590_v50 = vld [vmem:[%s1317_s1 + $0x40] ss:$8 sps:$4 sm:$0xff]   ;;  %v3592_v52 = vld [vmem:[%s1317_s1 + $0x50] ss:$8 sps:$4 sm:$0xff]   ;;  %s1310_s4 = sadd.s32 1, %s4169_s4  }
 0x332   : >> { %3278 = vmatpush3.bf16.msra.mxu0 %v3584_v42  ;;  %v3593_v53 = vld [vmem:[%s1317_s1 + $0xe0] ss:$8 sps:$4 sm:$0xff]   ;;  %v3595_v55 = vld [vmem:[%s1317_s1 + $0xf0] ss:$8 sps:$4 sm:$0xff]   ;;  %p1307_p2 = scmp.ge.s32.totalorder %s1310_s4, 2  }
 0x333   : >> { %3279 = vmatprep.subr.bf16.mxu0 %v3585_v45  ;;  %v3594_v54 = vld [vmem:[%s1317_s1 + $0x60] ss:$8 sps:$4 sm:$0xff]   ;;  %v3596_v56 = vld [vmem:[%s1317_s1 + $0x70] ss:$8 sps:$4 sm:$0xff]   ;;  %v3611_v45 = vld [vmem:[%s4702_s27 + $0x44] ss:$8 sps:$4 sm:$0xff]  }
 0x334   : >> { %v1497_v57 = vld [vmem:[%s1496_s10] sm:$0xf]  ;;  %v3606_v42 = vld [vmem:[%s4702_s27 + $0x30] ss:$8 sps:$4 sm:$0xff]   ;;  %s4899_s20 = sld [smem:[#allocation30_spill]] (%p1307_p2)  ;;  %s4900_s30 = sld [smem:[#allocation31_spill]] (%p1307_p2) }
 0x335   : >> { %v1558_v22 = vld [vmem:[%s1557_s16] sm:$0xf]  ;;  %v3625_v0 = vld [vmem:[#allocation15 + $0x4] ss:$16 sps:$4 sm:$0xff] (%p1307_p2)   ;;  %v3629_v6 = vld [vmem:[#allocation15] ss:$16 sps:$4 sm:$0xff] (%p1307_p2)  }
 0x336   : >> { %3280 = vmatpush3.bf16.msra.mxu0 %v3586_v46  ;;  %v1564_v23 = vsel %vm1562_vm8, %v1558_v22, 0  ;;  %v3597_v28 = vld [vmem:[%s4702_s27] ss:$8 sps:$4 sm:$0xff]   ;;  %v3635_v9 = vld [vmem:[#allocation15 + $0x20] ss:$16 sps:$4 sm:$0xff] (%p1307_p2)   ;;  %s4901_s10 = sld [smem:[#allocation32_spill]] (%p1307_p2) }
 0x337   : >> { %3281 = vmatprep.subr.bf16.mxu0 %v3587_v47  ;;  %3308 = vmatpush3.bf16.msra.mxu1 %v1564_v23  ;;  %v3603_v40 = vld [vmem:[%s4702_s27 + $0x20] ss:$8 sps:$4 sm:$0xff]   ;;  %v3614_v47 = vld [vmem:[%s4702_s27 + $0x54] ss:$8 sps:$4 sm:$0xff]   ;;  %s3264_s4 = sshll.u32 (%p1307_p2), %s4149_s24, 8  ;;  %s2815_s19 = sshll.u32 (%p1307_p2), %s4661_s8, 4  ;;  %s4788_s19 = int_to_ptr.vmem [resolvable:$true] %s2815_s19 }
 0x338   : >> { %1708 = vmatprep.subr.bf16.mxu1 %v3599_v24  ;;  %v3609_v46 = vld [vmem:[%s4702_s27 + $0x40] ss:$8 sps:$4 sm:$0xff]   ;;  %v3653_v22 = vld [vmem:[#allocation15 + $0x80] ss:$16 sps:$4 sm:$0xff] (%p1307_p2)   ;;  %v3654_v23 = vld [vmem:[#allocation15 + $0x88] ss:$16 sps:$4 sm:$0xff] (%p1307_p2)  }
 0x339   : > { %v3631_v36 = vld [vmem:[#allocation15 + $0x24] ss:$16 sps:$4 sm:$0xff] (%p1307_p2)   ;;  %s4904_s28 = sld [smem:[#allocation36_spill]] (%p1307_p2)  ;;  %s2799_s12 = scalar_lea.sflag (%p1307_p2), [#allocation6], %s4554_s18 }
 0x33a   : >> { %3282 = vmatpush3.bf16.msra.mxu0 %v3588_v48  ;;  %v3612_v48 = vld [vmem:[%s4702_s27 + $0x50] ss:$8 sps:$4 sm:$0xff]   ;;  %s4047_s24 = scalar_lea.vmem (%p1307_p2), %s4788_s19, 256  ;;  %p4905_p7 = scmp.ne.s32.totalorder (%p1307_p2), %s4888_s6, 0 }
 0x33b   : >> { %3283 = vmatprep.subr.bf16.mxu0 %v3589_v49  ;;  %v3617_v49 = vld [vmem:[%s4702_s27 + $0x64] ss:$8 sps:$4 sm:$0xff]   ;;  %v3655_v24 = vld [vmem:[#allocation15 + $0xa4] ss:$16 sps:$4 sm:$0xff] (%p1307_p2)   ;;  %p4048_p5 = scmp.ne.s32.totalorder (%p1307_p2), %s4788_s19, %s4047_s24  ;;  %s4186_s16 = smov (%p1307_p2), [#allocation18]  }
 0x33d   : > { %p4049_p11 = pnand (%p1307_p2), %p4048_p5, %p4905_p7 }
 0x33e   : >> { %3284 = vmatpush3.bf16.msra.mxu0 %v3590_v50  ;;  %v3615_v50 = vld [vmem:[%s4702_s27 + $0x60] ss:$8 sps:$4 sm:$0xff]  }
 0x33f   : >> { %3285 = vmatprep.subr.bf16.mxu0 %v3591_v51  ;;  %v3620_v51 = vld [vmem:[%s4702_s27 + $0x74] ss:$8 sps:$4 sm:$0xff]   ;;  %p4050_p12 = pneg (%p1307_p2), %p4049_p11 }
 0x342   : >> { %3286 = vmatpush3.bf16.msra.mxu0 %v3592_v52  ;;  %v3618_v52 = vld [vmem:[%s4702_s27 + $0x70] ss:$8 sps:$4 sm:$0xff]  }
 0x343   : >> { %3287 = vmatprep.subr.bf16.mxu0 %v3593_v53 }
 0x346   : >> { %3288 = vmatpush3.bf16.msra.mxu0 %v3594_v54 }
 0x347   : >> { %3289 = vmatprep.subr.bf16.mxu0 %v3595_v55 }
 0x34a   : >> { %3290 = vmatpush3.bf16.msra.mxu0 %v3596_v56 }
 0x34b   : >> { %3301 = vmatprep.subr.bf16.mxu0 %v4183_v34 }
 0x34d   : >> { %1487 = vmatmul.mubr.bf16.vlgmr.msra.gmra.mrb[0].mxu0 %v1303_v8  ;;  %v3633_v8 = vld [vmem:[#allocation15 + $0x2c] ss:$16 sps:$4 sm:$0xff] (%p1307_p2)  }
 0x34e   : >> { %3303 = vmatprep.mubr.msk.bf16.mxu0 %vm4184_vm5, %v4183_v34  ;;  %v3600_v34 = vld [vmem:[%s4702_s27 + $0x10] ss:$8 sps:$4 sm:$0xff]   ;;  %s4902_s27 = sld [smem:[#allocation33_spill]] (%p1307_p2) }
 0x353   : >> { %3302 = vmatpush3.bf16.xpose.msra.mxu0 %v1497_v57 }
 0x354   : > { %2226 = vmatprep.subr.bf16.mxu0 (%p1307_p2), %v3625_v0  ;;  %v3701_v0 = vld [vmem:[#allocation15 + $0x180] ss:$16 sps:$4 sm:$0xff] (%p1307_p2)  }
 0x420   : >> { %v3291_v58 = vpop.f32.mrb[0].mxu0 }
 0x421   : >> { %v3292_v60 = vpop.f32.mrb[1].mxu0 }
 0x422   : >> { %v3293_v61 = vadd.f32 %v3292_v60, %v3291_v58  ;;  %v3294_v62 = vpop.f32.mrb[2].mxu0 }
 0x423   : >> { %v3295_v63 = vpop.f32.mrb[3].mxu0 }
 0x424   : >> { %v1489_v3 = vadd.f32 %v3293_v61, %v3091_v59 }
 0x426   : >> { %v1494_v4 = vpack.c.bf16 %v1489_v3, %v1489_v3 }
 0x428   : >> { %3304 = vmatmul.mubr.bf16.vlgmr.msra.gmra.mrb[4].mxu0 %v1494_v4 }
 0x429   : > { %2227 = vmatpush1.bf16.msra.mxu0 (%p1307_p2), %v3629_v6  ;;  %v3703_v6 = vld [vmem:[#allocation15 + $0x1a4] ss:$16 sps:$4 sm:$0xff] (%p1307_p2)  }
 0x42a   : > { %2228 = vmatprep.subr.bf16.mxu0 (%p1307_p2), %v3631_v36  ;;  %v3707_v36 = vld [vmem:[#allocation15 + $0x1a0] ss:$16 sps:$4 sm:$0xff] (%p1307_p2)  }
 0x42d   : > { %2229 = vmatpush1.bf16.msra.mxu0 (%p1307_p2), %v3635_v9  ;;  %v3709_v9 = vld [vmem:[#allocation15 + $0x1c4] ss:$16 sps:$4 sm:$0xff] (%p1307_p2)  }
 0x4fb   : >> { %v1532_v37 = vpop.f32.mrb[4].mxu0 }
 0x4fc   : >> { %v1538_v7 = vmul.f32 0.088388346, %v1532_v37  ;;  %v3305_v11 = vpop.f32.mrb[5].mxu0 }
 0x4fd   : >> { %v1535_v13 = vpop.f32.mrb[6].mxu0  ;;  %v3637_v11 = vld [vmem:[#allocation15 + $0x44] ss:$16 sps:$4 sm:$0xff] (%p1307_p2)  }
 0x4fe   : >> { %v3306_v14 = vpop.f32.mrb[7].mxu0  ;;  %v1542_v15 = vsel %vm1541_vm6, %v1538_v7, -1e+09  ;;  %v3639_v13 = vld [vmem:[#allocation15 + $0x4c] ss:$16 sps:$4 sm:$0xff] (%p1307_p2)   ;;  %2230 = vmatprep.subr.bf16.mxu0 (%p1307_p2), %v3637_v11 }
 0x4ff   : >> { %v1544_v16 = vsel %vm1543_vm7, %v1542_v15, -inf  ;;  %v3641_v14 = vld [vmem:[#allocation15 + $0x40] ss:$16 sps:$4 sm:$0xff] (%p1307_p2)  }
 0x500   : >> { %1545 = vmax.xlane.f32.xlu0 %v1544_v16  ;;  %v3643_v16 = vld [vmem:[#allocation15 + $0x64] ss:$16 sps:$4 sm:$0xff] (%p1307_p2)   ;;  %2231 = vmatpush1.bf16.msra.mxu0 (%p1307_p2), %v3641_v14  ;;  %v3713_v11 = vld [vmem:[#allocation15 + $0x1c0] ss:$16 sps:$4 sm:$0xff] (%p1307_p2)  }
 0x501   : > { %2232 = vmatprep.subr.bf16.mxu0 (%p1307_p2), %v3643_v16  ;;  %v3715_v14 = vld [vmem:[#allocation15 + $0x1e4] ss:$16 sps:$4 sm:$0xff] (%p1307_p2)   ;;  %v3719_v16 = vld [vmem:[#allocation15 + $0x1e0] ss:$16 sps:$4 sm:$0xff] (%p1307_p2)  }
 0x58d   : >> { %v1546_v17 = vpop.xlane.xlu0 %1545 }
 0x58e   : >> { %v1547_v18 = vsub.f32 %v1542_v15, %v1546_v17  ;;  %v3642_v15 = vld [vmem:[#allocation15 + $0x48] ss:$16 sps:$4 sm:$0xff] (%p1307_p2)   ;;  %v3645_v17 = vld [vmem:[#allocation15 + $0x6c] ss:$16 sps:$4 sm:$0xff] (%p1307_p2)  }
 0x590   : >> { %v1548_v19 = vmul.f32 1.442695, %v1547_v18  ;;  %v3647_v18 = vld [vmem:[#allocation15 + $0x60] ss:$16 sps:$4 sm:$0xff] (%p1307_p2)  }
 0x591   : > { %2233 = vmatpush1.bf16.msra.mxu0 (%p1307_p2), %v3647_v18  ;;  %v3723_v18 = vld [vmem:[#allocation16 + $0x4] ss:$8 sps:$4 sm:$0xff] (%p1307_p2)  }
 0x592   : >> { %3621 = vpow2.f32 %v1548_v19  ;;  %v3648_v19 = vld [vmem:[#allocation15 + $0x68] ss:$16 sps:$4 sm:$0xff] (%p1307_p2)  }
 0x59c   : >> { %v3622_v20 = vpop.eup %3621 }
 0x59d   : >> { %v1550_v21 = vsel %vm1543_vm7, %v3622_v20, 0.0 }
 0x59e   : >> { %1551 = vadd.xlane.f32.xlu0 %v1550_v21  ;;  %v3651_v21 = vld [vmem:[#allocation15 + $0x8c] ss:$16 sps:$4 sm:$0xff] (%p1307_p2)  }
 0x62b   : >> { %v1552_v25 = vpop.xlane.xlu0 %1551 }
 0x62c   : >> { %3623 = vrcp.f32 %v1552_v25  ;;  %v3657_v25 = vld [vmem:[#allocation15 + $0xac] ss:$16 sps:$4 sm:$0xff] (%p1307_p2)  }
 0x636   : >> { %v3624_v26 = vpop.eup %3623 }
 0x637   : >> { %v1554_v27 = vmul.f32 %v3624_v26, %v3622_v20  ;;  %v3649_v20 = vld [vmem:[#allocation15 + $0x84] ss:$16 sps:$4 sm:$0xff] (%p1307_p2)   ;;  %v3659_v26 = vld [vmem:[#allocation15 + $0xa0] ss:$16 sps:$4 sm:$0xff] (%p1307_p2)  }
 0x638   : > { %2234 = vmatprep.subr.bf16.mxu0 (%p1307_p2), %v3649_v20 }
 0x639   : >> { %v1555_v29 = vpack.c.bf16 %v1554_v27, %v1554_v27  ;;  %v3660_v27 = vld [vmem:[#allocation15 + $0xa8] ss:$16 sps:$4 sm:$0xff] (%p1307_p2)   ;;  %2235 = vmatpush1.bf16.msra.mxu0 (%p1307_p2), %v3653_v22 }
 0x63a   : > { %2236 = vmatprep.subr.bf16.mxu0 (%p1307_p2), %v3655_v24 }
 0x63b   : >> { %3310 = vmatmul.mubr.msk.bf16.vlgmr.msra.gmra.mrb[0].mxu1 %vm1543_vm7, %v1555_v29  ;;  %v3663_v29 = vld [vmem:[#allocation15 + $0xcc] ss:$16 sps:$4 sm:$0xff] (%p1307_p2)  }
 0x63c   : >> { %1709 = vmatpush1.bf16.msra.mxu1 %v3597_v28  ;;  %1740 = vmatprep.mubr.bf16.mxu1 %v4185_v38  ;;  %v3661_v28 = vld [vmem:[#allocation15 + $0xc4] ss:$16 sps:$4 sm:$0xff] (%p1307_p2)  }
 0x63d   : >> { %1710 = vmatprep.subr.bf16.mxu1 %v3602_v30  ;;  %v3665_v30 = vld [vmem:[#allocation15 + $0xc0] ss:$16 sps:$4 sm:$0xff] (%p1307_p2)   ;;  %2237 = vmatpush1.bf16.msra.mxu0 (%p1307_p2), %v3659_v26 }
 0x63e   : > { %2238 = vmatprep.subr.bf16.mxu0 (%p1307_p2), %v3661_v28  ;;  %v1767_v28 = vld [vmem:[%s4900_s30] sm:$0x3] (%p1307_p2) }
 0x640   : >> { %1711 = vmatpush1.bf16.msra.mxu1 %v3600_v34  ;;  %v3666_v34 = vld [vmem:[#allocation15 + $0xc8] ss:$16 sps:$4 sm:$0xff] (%p1307_p2)  }
 0x641   : >> { %1712 = vmatprep.subr.bf16.mxu1 %v3605_v35  ;;  %2239 = vmatpush1.bf16.msra.mxu0 (%p1307_p2), %v3665_v30  ;;  %v1798_v30 = vrot.slane (%p1307_p2), %v1767_v28, %v4620_v44 }
 0x644   : >> { %1713 = vmatpush1.bf16.msra.mxu1 %v3603_v40 }
 0x645   : >> { %1714 = vmatprep.subr.bf16.mxu1 %v3608_v41 }
 0x648   : >> { %1715 = vmatpush1.bf16.msra.mxu1 %v3606_v42 }
 0x649   : >> { %1716 = vmatprep.subr.bf16.mxu1 %v3611_v45 }
 0x64c   : >> { %1717 = vmatpush1.bf16.msra.mxu1 %v3609_v46 }
 0x64d   : >> { %1718 = vmatprep.subr.bf16.mxu1 %v3614_v47 }
 0x650   : >> { %1719 = vmatpush1.bf16.msra.mxu1 %v3612_v48  ;;  %v3667_v48 = vld [vmem:[#allocation15 + $0xe4] ss:$16 sps:$4 sm:$0xff] (%p1307_p2)  }
 0x651   : >> { %1720 = vmatprep.subr.bf16.mxu1 %v3617_v49  ;;  %v3669_v49 = vld [vmem:[#allocation15 + $0xec] ss:$16 sps:$4 sm:$0xff] (%p1307_p2)   ;;  %2240 = vmatprep.subr.bf16.mxu0 (%p1307_p2), %v3667_v48 }
 0x654   : >> { %1721 = vmatpush1.bf16.msra.mxu1 %v3615_v50  ;;  %v3671_v50 = vld [vmem:[#allocation15 + $0xe0] ss:$16 sps:$4 sm:$0xff] (%p1307_p2)  }
 0x655   : >> { %1722 = vmatprep.subr.bf16.mxu1 %v3620_v51  ;;  %v3672_v51 = vld [vmem:[#allocation15 + $0xe8] ss:$16 sps:$4 sm:$0xff] (%p1307_p2)   ;;  %2241 = vmatpush1.bf16.msra.mxu0 (%p1307_p2), %v3671_v50 }
 0x658   : >> { %1723 = vmatpush1.bf16.msra.mxu1 %v3618_v52  ;;  %v3673_v52 = vld [vmem:[#allocation15 + $0x104] ss:$16 sps:$4 sm:$0xff] (%p1307_p2)  }
 0x659   : > { %2242 = vmatprep.subr.bf16.mxu0 (%p1307_p2), %v3673_v52 }
 0x70e   : >> { %v1600_v53 = vpop.f32.mrb[0].mxu1 }
 0x70f   : >> { %v1606_v54 = vpack.c.bf16 %v1600_v53, %v1600_v53  ;;  %v3311_v55 = vpop.f32.mrb[1].mxu1  ;;  %v3675_v53 = vld [vmem:[#allocation15 + $0x10c] ss:$16 sps:$4 sm:$0xff] (%p1307_p2)  }
 0x710   : >> { %v1603_v56 = vpop.f32.mrb[2].mxu1  ;;  %v3678_v55 = vld [vmem:[#allocation15 + $0x108] ss:$16 sps:$4 sm:$0xff] (%p1307_p2)  }
 0x711   : >> { %v3312_v57 = vpop.f32.mrb[3].mxu1  ;;  %1741 = vmatmul.mubr.bf16.vlgmr.msra.gmra.mrb[4].mxu1 %v1606_v54  ;;  %v3677_v54 = vld [vmem:[#allocation15 + $0x100] ss:$16 sps:$4 sm:$0xff] (%p1307_p2)   ;;  %v3679_v56 = vld [vmem:[#allocation15 + $0x124] ss:$16 sps:$4 sm:$0xff] (%p1307_p2)  }
 0x712   : > { %2243 = vmatpush1.bf16.msra.mxu0 (%p1307_p2), %v3677_v54  ;;  %v3681_v57 = vld [vmem:[#allocation15 + $0x12c] ss:$16 sps:$4 sm:$0xff] (%p1307_p2)   ;;  %v3721_v54 = vld [vmem:[#allocation16] ss:$8 sps:$4 sm:$0xff] (%p1307_p2)  }
 0x713   : > { %2244 = vmatprep.subr.bf16.mxu0 (%p1307_p2), %v3679_v56  ;;  %v3729_v56 = vld [vmem:[#allocation16 + $0x14] ss:$8 sps:$4 sm:$0xff] (%p1307_p2)  }
 0x7e2   : > { %1309 = sbr.rel (!%p1307_p2) target bundleno = 808 (0x328), region = 179 }
 0x7e4   : >> { %v1742_v58 = vpop.f32.mrb[4].mxu1 }
 0x7e5   : >> { %v1749_v59 = vadd.f32 %v4165_v32, %v1742_v58   ;;  %v1744_v60 = vpop.f32.mrb[5].mxu1  ;;  %v3683_v58 = vld [vmem:[#allocation15 + $0x120] ss:$16 sps:$4 sm:$0xff] (%p1307_p2)  }
 0x7e6   : >> { %v1750_v61 = vadd.f32 %v4161_v31, %v1744_v60   ;;  %v1746_v62 = vpop.f32.mrb[6].mxu1  ;;  %2245 = vmatpush1.bf16.msra.mxu0 (%p1307_p2), %v3683_v58  ;;  %v3685_v60 = vld [vmem:[#allocation15 + $0x144] ss:$16 sps:$4 sm:$0xff] (%p1307_p2)  }
 0x7e7   : >> { %v1747_v63 = vpop.f32.mrb[7].mxu1  ;;  %v4898_v32 = vmov %v1749_v59  ;;  %v1751_v3 = vadd.f32 (%p1307_p2), %v1749_v59, %v4587_v1  ;;  %v3627_v1 = vld [vmem:[#allocation15 + $0xc] ss:$16 sps:$4 sm:$0xff] (%p1307_p2)   ;;  %v3684_v59 = vld [vmem:[#allocation15 + $0x128] ss:$16 sps:$4 sm:$0xff] (%p1307_p2)   ;;  %2246 = vmatprep.subr.bf16.mxu0 (%p1307_p2), %v3685_v60 }
 0x7e8   : >> { %v4897_v31 = vmov %v1750_v61  ;;  %v1752_v4 = vadd.f32 (%p1307_p2), %v1750_v61, %v4589_v2  ;;  %v1753_v32 = vld [vmem:[%s4899_s20] sm:$0x3] (%p1307_p2)  ;;  %v3630_v2 = vld [vmem:[#allocation15 + $0x8] ss:$16 sps:$4 sm:$0xff] (%p1307_p2)   ;;  %2267 = vmatprep.subr.bf16.mxu1 (%p1307_p2), %v3627_v1  ;;  %v3689_v62 = vld [vmem:[#allocation15 + $0x140] ss:$16 sps:$4 sm:$0xff] (%p1307_p2)  }
 0x7e9   : > { %v1758_v38 = vrot.slane %v1753_v32, %v4617_v43  ;;  %v1762_v5 = vrot.slane %v1753_v32, %v4620_v44  ;;  %2268 = vmatpush1.bf16.msra.mxu1 %v3630_v2  ;;  %v3636_v31 = vld [vmem:[#allocation15 + $0x28] ss:$16 sps:$4 sm:$0xff]   ;;  %v3687_v61 = vld [vmem:[#allocation15 + $0x14c] ss:$16 sps:$4 sm:$0xff]   ;;  %v3695_v32 = vld [vmem:[#allocation15 + $0x160] ss:$16 sps:$4 sm:$0xff]  }
 0x7ea   : > { %2269 = vmatprep.subr.bf16.mxu1 %v3633_v8  ;;  %v3690_v63 = vld [vmem:[#allocation15 + $0x148] ss:$16 sps:$4 sm:$0xff]   ;;  %2247 = vmatpush1.bf16.msra.mxu0 %v3689_v62  ;;  %v3705_v2 = vld [vmem:[#allocation15 + $0x1ac] ss:$16 sps:$4 sm:$0xff]   ;;  %s4903_s20 = sld [smem:[#allocation34_spill]] }
 0x7eb   : > { %v4737_v39 = vadd.f32 %v1758_v38, %v1751_v3  ;;  %v4739_v37 = vadd.f32 %v1762_v5, %v1752_v4  ;;  %v3691_v3 = vld [vmem:[#allocation15 + $0x164] ss:$16 sps:$4 sm:$0xff]   ;;  %v3693_v4 = vld [vmem:[#allocation15 + $0x16c] ss:$16 sps:$4 sm:$0xff]   ;;  %v3696_v38 = vld [vmem:[#allocation15 + $0x168] ss:$16 sps:$4 sm:$0xff]  }
 0x7ec   : > { %v3697_v5 = vld [vmem:[#allocation15 + $0x184] ss:$16 sps:$4 sm:$0xff]   ;;  %2248 = vmatprep.subr.bf16.mxu0 %v3691_v3  ;;  %v3702_v1 = vld [vmem:[#allocation15 + $0x188] ss:$16 sps:$4 sm:$0xff]  }
 0x7ed   : > { %v1769_v7 = vadd.f32 %v4739_v37, %v4737_v39  ;;  %2270 = vmatpush1.bf16.msra.mxu1 %v3636_v31  ;;  %v3708_v8 = vld [vmem:[#allocation15 + $0x1a8] ss:$16 sps:$4 sm:$0xff]   ;;  %v3711_v31 = vld [vmem:[#allocation15 + $0x1cc] ss:$16 sps:$4 sm:$0xff]  }
 0x7ee   : > { %2271 = vmatprep.subr.bf16.mxu1 %v3639_v13  ;;  %2249 = vmatpush1.bf16.msra.mxu0 %v3695_v32  ;;  %v3714_v13 = vld [vmem:[#allocation15 + $0x1c8] ss:$16 sps:$4 sm:$0xff]   ;;  %v3735_v58 = vld [vmem:[#allocation16 + $0x24] ss:$8 sps:$4 sm:$0xff]   ;;  %v3741_v62 = vld [vmem:[#allocation16 + $0x34] ss:$8 sps:$4 sm:$0xff]  }
 0x7ef   : > { %1770 = vadd.xlane.f32.xlu0 %v1769_v7  ;;  %v3699_v7 = vld [vmem:[#allocation15 + $0x18c] ss:$16 sps:$4 sm:$0xff]   ;;  %2250 = vmatprep.subr.bf16.mxu0 %v3697_v5  ;;  %v3733_v60 = vld [vmem:[#allocation16 + $0x20] ss:$8 sps:$4 sm:$0xff]   ;;  %v3739_v3 = vld [vmem:[#allocation16 + $0x30] ss:$8 sps:$4 sm:$0xff]  }
 0x7f0   : > { %v3747_v32 = vld [vmem:[#allocation16 + $0x44] ss:$8 sps:$4 sm:$0xff]   ;;  %v3745_v5 = vld [vmem:[#allocation16 + $0x40] ss:$8 sps:$4 sm:$0xff]  }
 0x7f1   : > { %2272 = vmatpush1.bf16.msra.mxu1 %v3642_v15  ;;  %v3717_v15 = vld [vmem:[#allocation15 + $0x1ec] ss:$16 sps:$4 sm:$0xff]  }
 0x7f2   : > { %2273 = vmatprep.subr.bf16.mxu1 %v3645_v17  ;;  %2251 = vmatpush1.bf16.msra.mxu0 %v3701_v0  ;;  %v3720_v17 = vld [vmem:[#allocation15 + $0x1e8] ss:$16 sps:$4 sm:$0xff]   ;;  %v3753_v0 = vld [vmem:[#allocation16 + $0x54] ss:$8 sps:$4 sm:$0xff]  }
 0x7f3   : > { %2252 = vmatprep.subr.bf16.mxu0 %v3703_v6  ;;  %v3751_v6 = vld [vmem:[#allocation16 + $0x50] ss:$8 sps:$4 sm:$0xff]  }
 0x7f5   : > { %2274 = vmatpush1.bf16.msra.mxu1 %v3648_v19  ;;  %v3726_v19 = vld [vmem:[#allocation16 + $0x104] ss:$8 sps:$4 sm:$0xff]  }
 0x7f6   : > { %2275 = vmatprep.subr.bf16.mxu1 %v3651_v21  ;;  %2253 = vmatpush1.bf16.msra.mxu0 %v3707_v36  ;;  %v3759_v36 = vld [vmem:[#allocation16 + $0x64] ss:$8 sps:$4 sm:$0xff]  }
 0x7f7   : > { %2254 = vmatprep.subr.bf16.mxu0 %v3709_v9  ;;  %v3757_v9 = vld [vmem:[#allocation16 + $0x60] ss:$8 sps:$4 sm:$0xff]  }
 0x7f9   : > { %2276 = vmatpush1.bf16.msra.mxu1 %v3654_v23 }
 0x7fa   : > { %2277 = vmatprep.subr.bf16.mxu1 %v3657_v25  ;;  %2255 = vmatpush1.bf16.msra.mxu0 %v3713_v11  ;;  %v3765_v11 = vld [vmem:[#allocation16 + $0x74] ss:$8 sps:$4 sm:$0xff]  }
 0x7fb   : > { %2256 = vmatprep.subr.bf16.mxu0 %v3715_v14  ;;  %v3763_v14 = vld [vmem:[#allocation16 + $0x70] ss:$8 sps:$4 sm:$0xff]  }
 0x7fd   : > { %2278 = vmatpush1.bf16.msra.mxu1 %v3660_v27 }
 0x7fe   : > { %2279 = vmatprep.subr.bf16.mxu1 %v3663_v29  ;;  %2257 = vmatpush1.bf16.msra.mxu0 %v3719_v16  ;;  %v1794_v29 = vrot.slane %v1767_v28, %v4617_v43  ;;  %v3771_v16 = vld [vmem:[#allocation16 + $0x84] ss:$8 sps:$4 sm:$0xff]   ;;  %v3789_v28 = vld [vmem:[#allocation16 + $0xb4] ss:$8 sps:$4 sm:$0xff]  }
 0x7ff   : > { %2712 = vmatprep.subr.bf16.mxu0 %v3723_v18  ;;  %v3769_v18 = vld [vmem:[#allocation16 + $0x80] ss:$8 sps:$4 sm:$0xff]  }
 0x801   : > { %2280 = vmatpush1.bf16.msra.mxu1 %v3666_v34  ;;  %v1768_v34 = vld [vmem:[%s4901_s10] sm:$0x3]  ;;  %s4786_s10 = scalar_lea.hbm %s4904_s28, %s3264_s4 }
 0x802   : > { %2281 = vmatprep.subr.bf16.mxu1 %v3669_v49 }
 0x805   : > { %2282 = vmatpush1.bf16.msra.mxu1 %v3672_v51 }
 0x806   : > { %2283 = vmatprep.subr.bf16.mxu1 %v3675_v53 }
 0x809   : > { %2284 = vmatpush1.bf16.msra.mxu1 %v3678_v55  ;;  %v3724_v55 = vld [vmem:[#allocation16 + $0x100] ss:$8 sps:$4 sm:$0xff]  }
 0x80a   : > { %2285 = vmatprep.subr.bf16.mxu1 %v3681_v57  ;;  %v3732_v57 = vld [vmem:[#allocation16 + $0x114] ss:$8 sps:$4 sm:$0xff]  }
 0x80d   : > { %2286 = vmatpush1.bf16.msra.mxu1 %v3684_v59  ;;  %v3738_v59 = vld [vmem:[#allocation16 + $0x124] ss:$8 sps:$4 sm:$0xff]  }
 0x80e   : > { %2287 = vmatprep.subr.bf16.mxu1 %v3687_v61  ;;  %v3736_v61 = vld [vmem:[#allocation16 + $0x120] ss:$8 sps:$4 sm:$0xff]  }
 0x811   : > { %2288 = vmatpush1.bf16.msra.mxu1 %v3690_v63  ;;  %v3744_v63 = vld [vmem:[#allocation16 + $0x134] ss:$8 sps:$4 sm:$0xff]  }
 0x812   : > { %2289 = vmatprep.subr.bf16.mxu1 %v3693_v4  ;;  %v3742_v4 = vld [vmem:[#allocation16 + $0x130] ss:$8 sps:$4 sm:$0xff]  }
 0x815   : > { %2290 = vmatpush1.bf16.msra.mxu1 %v3696_v38  ;;  %v3750_v38 = vld [vmem:[#allocation16 + $0x144] ss:$8 sps:$4 sm:$0xff]  }
 0x816   : > { %2291 = vmatprep.subr.bf16.mxu1 %v3699_v7  ;;  %v3748_v7 = vld [vmem:[#allocation16 + $0x140] ss:$8 sps:$4 sm:$0xff]  }
 0x819   : > { %2292 = vmatpush1.bf16.msra.mxu1 %v3702_v1  ;;  %v3756_v1 = vld [vmem:[#allocation16 + $0x154] ss:$8 sps:$4 sm:$0xff]  }
 0x81a   : > { %2293 = vmatprep.subr.bf16.mxu1 %v3705_v2  ;;  %v3754_v2 = vld [vmem:[#allocation16 + $0x150] ss:$8 sps:$4 sm:$0xff]  }
 0x81d   : > { %2294 = vmatpush1.bf16.msra.mxu1 %v3708_v8  ;;  %v3762_v8 = vld [vmem:[#allocation16 + $0x164] ss:$8 sps:$4 sm:$0xff]  }
 0x81e   : > { %2295 = vmatprep.subr.bf16.mxu1 %v3711_v31  ;;  %v3760_v31 = vld [vmem:[#allocation16 + $0x160] ss:$8 sps:$4 sm:$0xff]  }
 0x821   : > { %2296 = vmatpush1.bf16.msra.mxu1 %v3714_v13  ;;  %v3768_v13 = vld [vmem:[#allocation16 + $0x174] ss:$8 sps:$4 sm:$0xff]  }
 0x822   : > { %2297 = vmatprep.subr.bf16.mxu1 %v3717_v15  ;;  %v3766_v15 = vld [vmem:[#allocation16 + $0x170] ss:$8 sps:$4 sm:$0xff]  }
 0x825   : > { %2298 = vmatpush1.bf16.msra.mxu1 %v3720_v17  ;;  %v3774_v17 = vld [vmem:[#allocation16 + $0x184] ss:$8 sps:$4 sm:$0xff]  }
 0x826   : > { %2753 = vmatprep.subr.bf16.mxu1 %v3726_v19  ;;  %v3772_v19 = vld [vmem:[#allocation16 + $0x180] ss:$8 sps:$4 sm:$0xff]  }
 0x87c   : > { %v1771_v35 = vpop.xlane.xlu0 %1770 }
 0x87d   : > { %v1772_v40 = vmul.f32 0.00390625, %v1771_v35 }
 0x87f   : > { %v4744_v41 = vsub.f32 %v4737_v39, %v1772_v40  ;;  %v4747_v42 = vsub.f32 %v4739_v37, %v1772_v40 }
 0x881   : > { %v1775_v45 = vmul.f32 %v4744_v41, %v4744_v41  ;;  %v1776_v46 = vmul.f32 %v4747_v42, %v4747_v42  ;;  %v1801_v35 = vmul.f32 %v1794_v29, %v4744_v41  ;;  %v1802_v40 = vmul.f32 %v1798_v30, %v4747_v42  ;;  %v3727_v41 = vld [vmem:[#allocation16 + $0x10] ss:$8 sps:$4 sm:$0xff]   ;;  %v3792_v29 = vld [vmem:[#allocation16 + $0x1b4] ss:$8 sps:$4 sm:$0xff]  }
 0x882   : > { %v3730_v42 = vld [vmem:[#allocation16 + $0x110] ss:$8 sps:$4 sm:$0xff]  }
 0x883   : > { %v1777_v47 = vadd.f32 %v1776_v46, %v1775_v45  ;;  %v1809_v45 = vrot.slane %v1768_v34, %v4617_v43  ;;  %v1813_v46 = vrot.slane %v1768_v34, %v4620_v44  ;;  %v3787_v30 = vld [vmem:[#allocation16 + $0xb0] ss:$8 sps:$4 sm:$0xff]  }
 0x884   : > { %v3790_v34 = vld [vmem:[#allocation16 + $0x1b0] ss:$8 sps:$4 sm:$0xff]  }
 0x885   : > { %1778 = vadd.xlane.f32.xlu0 %v1777_v47 }
 0x912   : > { %v1779_v20 = vpop.xlane.xlu0 %1778 }
 0x913   : > { %v1780_v21 = vmul.f32 0.003921569, %v1779_v20  ;;  %v3777_v20 = vld [vmem:[#allocation16 + $0x94] ss:$8 sps:$4 sm:$0xff]  }
 0x915   : > { %3817 = vrsqrt.f32 %v1780_v21  ;;  %vm1783_vm9 = vcmp.eq.f32.partialorder %v1780_v21, inf  ;;  %v1786_v24 = vand.u32 2147483648, %v1780_v21  ;;  %vm1785_vm10 = vcmp.eq.f32.partialorder %v1780_v21, 0.0 }
 0x91f   : > { %v3818_v22 = vpop.eup %3817 }
 0x920   : > { %v1782_v23 = vmul.f32 %v3818_v22, %v1780_v21  ;;  %v3775_v22 = vld [vmem:[#allocation16 + $0x90] ss:$8 sps:$4 sm:$0xff]  }
 0x922   : > { %v1784_v25 = vsel %vm1783_vm9, %v1780_v21, %v1782_v23  ;;  %v3780_v21 = vld [vmem:[#allocation16 + $0x194] ss:$8 sps:$4 sm:$0xff]   ;;  %v3778_v23 = vld [vmem:[#allocation16 + $0x190] ss:$8 sps:$4 sm:$0xff]  }
 0x923   : > { %v1787_v26 = vsel %vm1785_vm10, %v1786_v24, %v1784_v25  ;;  %v3783_v24 = vld [vmem:[#allocation16 + $0xa4] ss:$8 sps:$4 sm:$0xff]  }
 0x924   : > { %v1788_v27 = vadd.f32 1e-06, %v1787_v26  ;;  %v3786_v25 = vld [vmem:[#allocation16 + $0x1a4] ss:$8 sps:$4 sm:$0xff]   ;;  %v3781_v26 = vld [vmem:[#allocation16 + $0xa0] ss:$8 sps:$4 sm:$0xff]  }
 0x926   : > { %3819 = vrcp.f32 %v1788_v27  ;;  %v3784_v27 = vld [vmem:[#allocation16 + $0x1a0] ss:$8 sps:$4 sm:$0xff]  }
 0x930   : > { %v3820_v47 = vpop.eup %3819 }
 0x931   : > { %v1804_v48 = vmul.f32 %v3820_v47, %v1802_v40  ;;  %v1803_v49 = vmul.f32 %v3820_v47, %v1801_v35  ;;  %v3795_v35 = vld [vmem:[#allocation16 + $0xc4] ss:$8 sps:$4 sm:$0xff]   ;;  %v3801_v47 = vld [vmem:[#allocation16 + $0xd4] ss:$8 sps:$4 sm:$0xff]  }
 0x932   : > { %v3798_v40 = vld [vmem:[#allocation16 + $0x1c4] ss:$8 sps:$4 sm:$0xff]  }
 0x933   : > { %v1817_v50 = vadd.f32 %v1813_v46, %v1804_v48  ;;  %v1816_v51 = vadd.f32 %v1809_v45, %v1803_v49  ;;  %v3793_v45 = vld [vmem:[#allocation16 + $0xc0] ss:$8 sps:$4 sm:$0xff]   ;;  %v3804_v48 = vld [vmem:[#allocation16 + $0x1d4] ss:$8 sps:$4 sm:$0xff]   ;;  %v3799_v49 = vld [vmem:[#allocation16 + $0xd0] ss:$8 sps:$4 sm:$0xff]  }
 0x934   : > { %v3796_v46 = vld [vmem:[#allocation16 + $0x1c0] ss:$8 sps:$4 sm:$0xff]  }
 0x935   : > { %v1819_v52 = vpack.c.bf16 %v1817_v50, %v1817_v50  ;;  %v1818_v53 = vpack.c.bf16 %v1816_v51, %v1816_v51  ;;  %v3802_v50 = vld [vmem:[#allocation16 + $0x1d0] ss:$8 sps:$4 sm:$0xff]   ;;  %v3807_v51 = vld [vmem:[#allocation16 + $0xe4] ss:$8 sps:$4 sm:$0xff]  }
 0x937   : > { %2258 = vmatprep.mubr.bf16.mxu0 %v1819_v52  ;;  %2299 = vmatprep.mubr.bf16.mxu1 %v1819_v52  ;;  %v3810_v52 = vld [vmem:[#allocation16 + $0x1e4] ss:$8 sps:$4 sm:$0xff]  }
 0x938   : > { %2259 = vmatmul.mubr.bf16.vlgmr.msra.gmra.mrb[0].mxu0 %v1818_v53  ;;  %2300 = vmatmul.mubr.bf16.vlgmr.msra.gmra.mrb[0].mxu1 %v1818_v53  ;;  %v3805_v53 = vld [vmem:[#allocation16 + $0xe0] ss:$8 sps:$4 sm:$0xff]  }
 0x939   : > { %2713 = vmatpush1.bf16.msra.mxu0 %v3721_v54  ;;  %2754 = vmatpush1.bf16.msra.mxu1 %v3724_v55  ;;  %v3808_v54 = vld [vmem:[#allocation16 + $0x1e0] ss:$8 sps:$4 sm:$0xff]   ;;  %v3813_v55 = vld [vmem:[#allocation16 + $0xf4] ss:$8 sps:$4 sm:$0xff]  }
 0x93a   : > { %2714 = vmatprep.subr.bf16.mxu0 %v3729_v56  ;;  %2755 = vmatprep.subr.bf16.mxu1 %v3732_v57  ;;  %v3816_v56 = vld [vmem:[#allocation16 + $0x1f4] ss:$8 sps:$4 sm:$0xff]   ;;  %v3811_v57 = vld [vmem:[#allocation16 + $0xf0] ss:$8 sps:$4 sm:$0xff]  }
 0x93d   : > { %2715 = vmatpush1.bf16.msra.mxu0 %v3727_v41  ;;  %2756 = vmatpush1.bf16.msra.mxu1 %v3730_v42  ;;  %v3814_v41 = vld [vmem:[#allocation16 + $0x1f0] ss:$8 sps:$4 sm:$0xff]   ;;  %v1884_v42 = vld [vmem:[%s4902_s27] sm:$0xf]  ;;  %s4051_s27 = sshll.u32 %s4186_s16, 4  ;;  %s4052_s27 = int_to_ptr.vmem [resolvable:$false] %s4051_s27 }
 0x93e   : > { %2716 = vmatprep.subr.bf16.mxu0 %v3735_v58  ;;  %2757 = vmatprep.subr.bf16.mxu1 %v3738_v59  ;;  %v1889_v58 = vrot.slane %v1884_v42, %v4617_v43  ;;  %v1897_v59 = vrot.slane %v1884_v42, %v820_v10  ;;  %s4053_s9 = scalar_lea.vmem %s4052_s27, 512  ;;  %p4054_p0 = scmp.lt.s32.totalorder %s4788_s19, %s4052_s27 }
 0x93f   : > { %p4055_p8 = scmp.lt.s32.totalorder %s4053_s9, %s4047_s24 }
 0x941   : > { %2717 = vmatpush1.bf16.msra.mxu0 %v3733_v60  ;;  %2758 = vmatpush1.bf16.msra.mxu1 %v3736_v61  ;;  %v1893_v60 = vrot.slane %v1884_v42, %v4620_v44  ;;  %v1901_v61 = vrot.slane %v1884_v42, %v824_v12  ;;  %p4056_p9 = por %p4055_p8, %p4054_p0 }
 0x942   : > { %2718 = vmatprep.subr.bf16.mxu0 %v3741_v62  ;;  %2759 = vmatprep.subr.bf16.mxu1 %v3744_v63 }
 0x943   : > { %p4057_p1 = pnand %p4056_p9, %p4050_p12 }
 0x945   : > { %2719 = vmatpush1.bf16.msra.mxu0 %v3739_v3  ;;  %2760 = vmatpush1.bf16.msra.mxu1 %v3742_v4 }
 0x946   : > { %2720 = vmatprep.subr.bf16.mxu0 %v3747_v32  ;;  %2761 = vmatprep.subr.bf16.mxu1 %v3750_v38 }
 0x949   : > { %2721 = vmatpush1.bf16.msra.mxu0 %v3745_v5  ;;  %2762 = vmatpush1.bf16.msra.mxu1 %v3748_v7 }
 0x94a   : > { %2722 = vmatprep.subr.bf16.mxu0 %v3753_v0  ;;  %2763 = vmatprep.subr.bf16.mxu1 %v3756_v1 }
 0x94d   : > { %2723 = vmatpush1.bf16.msra.mxu0 %v3751_v6  ;;  %2764 = vmatpush1.bf16.msra.mxu1 %v3754_v2 }
 0x94e   : > { %2724 = vmatprep.subr.bf16.mxu0 %v3759_v36  ;;  %2765 = vmatprep.subr.bf16.mxu1 %v3762_v8 }
 0x951   : > { %2725 = vmatpush1.bf16.msra.mxu0 %v3757_v9  ;;  %2766 = vmatpush1.bf16.msra.mxu1 %v3760_v31 }
 0x952   : > { %2726 = vmatprep.subr.bf16.mxu0 %v3765_v11  ;;  %2767 = vmatprep.subr.bf16.mxu1 %v3768_v13  ;;  %v2380_v13 = vld [vmem:[%s4903_s20] sm:$0x3] }
 0x955   : > { %2727 = vmatpush1.bf16.msra.mxu0 %v3763_v14  ;;  %2768 = vmatpush1.bf16.msra.mxu1 %v3766_v15  ;;  %v2385_v14 = vrot.slane %v2380_v13, %v4617_v43  ;;  %v2389_v15 = vrot.slane %v2380_v13, %v4620_v44 }
 0x956   : > { %2728 = vmatprep.subr.bf16.mxu0 %v3771_v16  ;;  %2769 = vmatprep.subr.bf16.mxu1 %v3774_v17 }
 0x959   : > { %2729 = vmatpush1.bf16.msra.mxu0 %v3769_v18  ;;  %2770 = vmatpush1.bf16.msra.mxu1 %v3772_v19 }
 0x95a   : > { %2730 = vmatprep.subr.bf16.mxu0 %v3777_v20  ;;  %2771 = vmatprep.subr.bf16.mxu1 %v3780_v21 }
 0x95d   : > { %2731 = vmatpush1.bf16.msra.mxu0 %v3775_v22  ;;  %2772 = vmatpush1.bf16.msra.mxu1 %v3778_v23 }
 0x95e   : > { %2732 = vmatprep.subr.bf16.mxu0 %v3783_v24  ;;  %2773 = vmatprep.subr.bf16.mxu1 %v3786_v25 }
 0x961   : > { %2733 = vmatpush1.bf16.msra.mxu0 %v3781_v26  ;;  %2774 = vmatpush1.bf16.msra.mxu1 %v3784_v27 }
 0x962   : > { %2734 = vmatprep.subr.bf16.mxu0 %v3789_v28  ;;  %2775 = vmatprep.subr.bf16.mxu1 %v3792_v29 }
 0x965   : > { %2735 = vmatpush1.bf16.msra.mxu0 %v3787_v30  ;;  %2776 = vmatpush1.bf16.msra.mxu1 %v3790_v34 }
 0x966   : > { %2736 = vmatprep.subr.bf16.mxu0 %v3795_v35  ;;  %2777 = vmatprep.subr.bf16.mxu1 %v3798_v40 }
 0x969   : > { %2737 = vmatpush1.bf16.msra.mxu0 %v3793_v45  ;;  %2778 = vmatpush1.bf16.msra.mxu1 %v3796_v46 }
 0x96a   : > { %2738 = vmatprep.subr.bf16.mxu0 %v3801_v47  ;;  %2779 = vmatprep.subr.bf16.mxu1 %v3804_v48 }
 0x96d   : > { %2739 = vmatpush1.bf16.msra.mxu0 %v3799_v49  ;;  %2780 = vmatpush1.bf16.msra.mxu1 %v3802_v50 }
 0x96e   : > { %2740 = vmatprep.subr.bf16.mxu0 %v3807_v51  ;;  %2781 = vmatprep.subr.bf16.mxu1 %v3810_v52 }
 0x971   : > { %2741 = vmatpush1.bf16.msra.mxu0 %v3805_v53  ;;  %2782 = vmatpush1.bf16.msra.mxu1 %v3808_v54 }
 0x972   : > { %2742 = vmatprep.subr.bf16.mxu0 %v3813_v55  ;;  %2783 = vmatprep.subr.bf16.mxu1 %v3816_v56 }
 0x975   : > { %2743 = vmatpush1.bf16.msra.mxu0 %v3811_v57  ;;  %2784 = vmatpush1.bf16.msra.mxu1 %v3814_v41 }
 0xa0b   : > { %v2260_v62 = vpop.f32.mrb[0].mxu0  ;;  %v2301_v63 = vpop.f32.mrb[0].mxu1 }
 0xa0c   : > { %v2261_v3 = vadd.f32 %v2260_v62, %v1889_v58  ;;  %v2302_v4 = vadd.f32 %v2301_v63, %v1897_v59  ;;  %v2262_v32 = vpop.f32.mrb[1].mxu0  ;;  %v2303_v38 = vpop.f32.mrb[1].mxu1 }
 0xa0d   : > { %v2263_v5 = vadd.f32 %v2262_v32, %v1893_v60  ;;  %v2304_v7 = vadd.f32 %v2303_v38, %v1901_v61  ;;  %v2264_v0 = vpop.f32.mrb[2].mxu0  ;;  %v2305_v1 = vpop.f32.mrb[2].mxu1 }
 0xa0e   : > { %v2308_v6 = vmax.f32 %v2261_v3, 0.0  ;;  %v2310_v2 = vmax.f32 %v2302_v4, 0.0  ;;  %v2265_v36 = vpop.f32.mrb[3].mxu0  ;;  %v2306_v8 = vpop.f32.mrb[3].mxu1 }
 0xa0f   : > { %v2309_v10 = vmax.f32 %v2263_v5, 0.0  ;;  %v2311_v9 = vmax.f32 %v2304_v7, 0.0 }
 0xa10   : > { %v2312_v33 = vpack.c.bf16 %v2308_v6, %v2308_v6  ;;  %v2314_v12 = vpack.c.bf16 %v2310_v2, %v2310_v2 }
 0xa11   : > { %v2313_v31 = vpack.c.bf16 %v2309_v10, %v2309_v10  ;;  %v2315_v11 = vpack.c.bf16 %v2311_v9, %v2311_v9 }
 0xa13   : > { %2744 = vmatprep.mubr.bf16.mxu0 %v2313_v31  ;;  %2785 = vmatprep.mubr.bf16.mxu1 %v2315_v11 }
 0xa14   : > { %2745 = vmatmul.mubr.bf16.vlgmr.msra.gmra.mrb[4].mxu0 %v2312_v33  ;;  %2786 = vmatmul.mubr.bf16.vlgmr.msra.gmra.mrb[4].mxu1 %v2314_v12 }
 0xae7   : > { %v2746_v16 = vpop.f32.mrb[4].mxu0  ;;  %v2787_v17 = vpop.f32.mrb[4].mxu1 }
 0xae8   : > { %v2747_v18 = vadd.f32 %v2746_v16, %v2385_v14  ;;  %v2748_v19 = vpop.f32.mrb[5].mxu0  ;;  %v2789_v20 = vpop.f32.mrb[5].mxu1 }
 0xae9   : > { %v2749_v21 = vadd.f32 %v2748_v19, %v2389_v15  ;;  %v2750_v22 = vpop.f32.mrb[6].mxu0  ;;  %v2791_v23 = vpop.f32.mrb[6].mxu1 }
 0xaea   : > { %v2788_v24 = vadd.f32 %v2787_v17, %v2747_v18  ;;  %v2751_v25 = vpop.f32.mrb[7].mxu0  ;;  %v2792_v26 = vpop.f32.mrb[7].mxu1 }
 0xaeb   : > { %v2790_v43 = vadd.f32 %v2789_v20, %v2749_v21 }
 0xaec   : > { %v2794_v44 = vadd.f32 %v2788_v24, %v4737_v39 }
 0xaed   : > { %v2795_v27 = vadd.f32 %v2790_v43, %v4739_v37 }
 0xaee   : > { %2796 = vst [vmem:[%s4661_s8] sm:$0xff] %v2794_v44 }
 0xaef   : > { %2797 = vst [vmem:[%s4661_s8 + $0x8] sm:$0xff] %v2795_v27 }
 0xaf0   : > { %4060 = shalt.err (!%p4057_p1)
}
 0xaf1   : > { %s4061_s18 = scalar_lea.hbm %s4786_s10, 256  ;;  %s4065_s20 = scalar_lea.hbm %s4904_s28, 512 }
 0xaf2   : > { %p4062_p3 = scmp.ne.s32.totalorder %s4786_s10, %s4061_s18  ;;  %p4066_p13 = scmp.lt.u32.totalorder %s4786_s10, %s4904_s28 }
 0xaf3   : > { %p4067_p6 = scmp.lt.u32.totalorder %s4065_s20, %s4061_s18  ;;  %p4069_p5 = scmp.lt.u32.totalorder %s4061_s18, %s4786_s10 }
 0xaf4   : > { %p4063_p10 = pnand %p4062_p3, %p4905_p7 }
 0xaf5   : > { %p4068_p2 = por %p4067_p6, %p4066_p13 }
 0xaf6   : > { %p4064_p4 = pneg %p4063_p10 }
 0xaf7   : > { %p4070_p11 = por %p4069_p5, %p4068_p2 }
 0xaf9   : > { %p4071_p12 = pnand %p4070_p11, %p4064_p4 }
 0xafb   : > { %4074 = shalt.err (!%p4071_p12)
}
 0xafc   : > { %3343 = dma.vmem_to_hbm [thread:$0]  (%p4905_p7), %s4788_s19, 256, %s4786_s10, %s2799_s12  }
 0xafd PF: > { %s2827_s1 = sand.u32 1, %s4137_s21   ;;  %p4906_p0 = scmp.ne.s32.totalorder %s4889_s15, 0 }
 0xafe   : > { %p4907_p8 = scmp.ge.s32.totalorder %s4157_s26, 2  ;;  %s2828_s24 = scalar_lea.sflag [#allocation6], %s2827_s1 }
 0xb00   : > { %p3372_p9 = pnand %p4907_p8, %p4906_p0 }
 0xb02   : > { %4132 = dma.done.wait (!%p3372_p9), %s2828_s24, 256  }
 0xb03   : > { %4134 = vsyncadd (!%p3372_p9), %s2828_s24, 4294967040  ;;  %s36_s26 = sadd.s32 1, %s4157_s26   ;;  %s4908_s21 = smov %s4141_s22 }
 0xb04   : > { %p33_p1 = scmp.ge.s32.totalorder %s36_s26, 4   ;;  %s4909_s22 = smov %s4145_s23 }
 0xb05   : > { %s4910_s23 = smov %s4505_s2  ;;  %s4911_s24 = smov %s4153_s25 }
 0xb06   : > { %s4912_s25 = smov %s4914_s17  ;;  %35 = sbr.rel (!%p33_p1) target bundleno = 23 (0x17), region = 190 }
 0xb0d   :  { %2833 = vsyncpa [#allocation5], 1 }
 0xb0e   :  { %2835 = vsyncpa [#allocation5 + $0x1], 1 }
 0xb0f   :  { %2836 = vsyncpa [#allocation8], 1 }
 0xb10   :  { %2837 = vsyncpa [#allocation11], 1 }
 0xb11   :  { %2838 = vsyncpa [#allocation14], 1 }
 0xb12   :  { %2839 = vsyncpa [#allocation17], 1 }
 0xb13   :  { %2840 = vsyncpa [#allocation6], 1 }
 0xb14   :  { %2842 = vsyncpa [#allocation6 + $0x1], 1 }

</bundles_post_ra>
